<compile_context>
chip_gen: v7x
topology: tpu7x:2x2x1
jax: 0.10.0
libtpu: 0.0.40
codegen_flags: <defaults>
</compile_context>

<pallas_src>
import math

import jax
import jax.numpy as jnp
from jax.experimental import pallas as pl
from jax.experimental.pallas import tpu as pltpu

# ---- small, module-consistent dimensions --------------------------------------
B, S, H = 2, 8, 32          # batch, text_max_length, config.dim (hidden)
NH, HD = 4, 8               # heads, head_dim
FFN = 4 * H                 # feed-forward inner dim
VOCAB = 100
N_LAYERS = 2
LN_EPS = 1e-12
NEG_INF = -1e9


# ---- in-kernel helpers ---------------------------------------------------------
def _layer_norm(x, g, b):
    mean = jnp.mean(x, axis=-1, keepdims=True)
    var = jnp.mean((x - mean) ** 2, axis=-1, keepdims=True)
    return (x - mean) * jax.lax.rsqrt(var + LN_EPS) * g + b


# ---- fused encoder kernel: embed-LN + all transformer layers -------------------
def encoder_kernel(emb_ref, negmask_ref, embg_ref, embb_ref,
                   wq_ref, bq_ref, wk_ref, bk_ref, wv_ref, bv_ref,
                   wo_ref, bo_ref, ln1g_ref, ln1b_ref,
                   w1_ref, b1_ref, w2_ref, b2_ref, ln2g_ref, ln2b_ref,
                   o_ref, x_vmem):
    l = pl.program_id(0)

    # layer 0 also performs the embedding LayerNorm (fused former embed_ln kernel)
    @pl.when(l == 0)
    def _():
        x_vmem[...] = _layer_norm(emb_ref[...], embg_ref[...], embb_ref[...])

    x = x_vmem[...]                                  # [B, S, H] f32, VMEM-resident
    xf = x.reshape(B * S, H)
    xb = xf.astype(jnp.bfloat16)                     # bf16 MXU operands, f32 accum

    q = (jnp.dot(xb, wq_ref[...], preferred_element_type=jnp.float32)
         + bq_ref[...]).reshape(B, S, H)
    k = (jnp.dot(xb, wk_ref[...], preferred_element_type=jnp.float32)
         + bk_ref[...]).reshape(B, S, H)
    v = (jnp.dot(xb, wv_ref[...], preferred_element_type=jnp.float32)
         + bv_ref[...]).reshape(B, S, H)

    q = q * (1.0 / math.sqrt(HD))                    # fold attention scale once
    neg = negmask_ref[...]                           # [B, 1, S] precomputed bias

    # TODO(synk): heads statically unrolled (see header) instead of one batched
    # 'bqnd,bknd->bnqk' contraction.
    ctx_heads = []
    for hi in range(NH):
        sl = slice(hi * HD, (hi + 1) * HD)
        qh = q[:, :, sl].astype(jnp.bfloat16)
        kh = k[:, :, sl].astype(jnp.bfloat16)
        vh = v[:, :, sl].astype(jnp.bfloat16)
        sc = jnp.einsum('bqd,bkd->bqk', qh, kh,
                        preferred_element_type=jnp.float32) + neg
        sc = sc - jnp.max(sc, axis=-1, keepdims=True)
        p = jnp.exp(sc)
        p = p * pl.reciprocal(jnp.sum(p, axis=-1, keepdims=True), approx=True)
        ctx_heads.append(jnp.einsum('bqk,bkd->bqd', p.astype(jnp.bfloat16), vh,
                                    preferred_element_type=jnp.float32))
    ctx = jnp.concatenate(ctx_heads, axis=-1)        # [B, S, H]

    attn = (jnp.dot(ctx.reshape(B * S, H).astype(jnp.bfloat16), wo_ref[...],
                    preferred_element_type=jnp.float32)
            + bo_ref[...]).reshape(B, S, H)
    x1 = _layer_norm(x + attn, ln1g_ref[...], ln1b_ref[...])

    h1 = (jnp.dot(x1.reshape(B * S, H).astype(jnp.bfloat16), w1_ref[...],
                  preferred_element_type=jnp.float32) + b1_ref[...])
    # TODO(synk): HF DistilBERT uses erf-GELU; tanh approximation used here.
    h1 = jax.nn.gelu(h1)
    ffn = (jnp.dot(h1.astype(jnp.bfloat16), w2_ref[...],
                   preferred_element_type=jnp.float32)
           + b2_ref[...]).reshape(B, S, H)
    x2 = _layer_norm(x1 + ffn, ln2g_ref[...], ln2b_ref[...])

    x_vmem[...] = x2                                 # carry to next layer

    @pl.when(l == N_LAYERS - 1)
    def _():
        o_ref[...] = x2                              # single HBM writeback


# ---- single fused pallas_call ---------------------------------------------------
def _stacked(t1, t2):
    # one layer's slab per grid step (leading layer dim squeezed away)
    return pl.BlockSpec((None, t1, t2), lambda l: (l, 0, 0))


_IN_SPECS = [
    pl.BlockSpec((B, S, H), lambda l: (0, 0, 0)),    # emb (resident, loaded once)
    pl.BlockSpec((B, 1, S), lambda l: (0, 0, 0)),    # additive key-mask bias
    pl.BlockSpec((1, H), lambda l: (0, 0)),          # emb_ln_g
    pl.BlockSpec((1, H), lambda l: (0, 0)),          # emb_ln_b
    _stacked(H, H),   _stacked(1, H),                # wq, bq
    _stacked(H, H),   _stacked(1, H),                # wk, bk
    _stacked(H, H),   _stacked(1, H),                # wv, bv
    _stacked(H, H),   _stacked(1, H),                # wo, bo
    _stacked(1, H),   _stacked(1, H),                # ln1 g, b
    _stacked(H, FFN), _stacked(1, FFN),              # w1, b1
    _stacked(FFN, H), _stacked(1, H),                # w2, b2
    _stacked(1, H),   _stacked(1, H),                # ln2 g, b
]

_encoder_call = pl.pallas_call(
    encoder_kernel,
    out_shape=jax.ShapeDtypeStruct((B, S, H), jnp.float32),
    grid=(N_LAYERS,),
    in_specs=_IN_SPECS,
    out_specs=pl.BlockSpec((B, S, H), lambda l: (0, 0, 0)),
    scratch_shapes=[pltpu.VMEM((B, S, H), jnp.float32)],   # resident activation
    compiler_params=pltpu.CompilerParams(
        dimension_semantics=("arbitrary",),          # layer axis is sequential
        vmem_limit_bytes=32 * 1024 * 1024,
    ),
)


@jax.jit
def encode(params, input_ids, attention_mask):
    """Whole forward pass under one jit: gather + one fused Pallas kernel."""
    p = params
    # glue: embedding gather + positional add in plain JAX
    emb = jnp.take(p['tok_emb'], input_ids, axis=0) + p['pos_emb'][None, :, :]
    # key-mask bias hoisted once for all layers (1 = keep, 0 = pad)
    neg = ((1.0 - attention_mask.astype(jnp.float32)) * NEG_INF)[:, None, :]
    return _encoder_call(
        emb, neg, p['emb_ln_g'], p['emb_ln_b'],
        p['wq'], p['bq'], p['wk'], p['bk'], p['wv'], p['bv'],
        p['wo'], p['bo'], p['ln1g'], p['ln1b'],
        p['w1'], p['b1'], p['w2'], p['b2'], p['ln2g'], p['ln2b'])


# ---- deterministic parameter init (stacked per-layer, bf16 matmul weights) -----
def init_params(key):
    keys = jax.random.split(key, 2 + N_LAYERS)
    layer_keys = [jax.random.split(keys[2 + li], 6) for li in range(N_LAYERS)]

    def lin(k, fan_in, fan_out):
        return jax.random.normal(k, (fan_in, fan_out), jnp.float32) / math.sqrt(fan_in)

    def stack_w(idx, fan_in, fan_out):
        w = jnp.stack([lin(layer_keys[li][idx], fan_in, fan_out)
                       for li in range(N_LAYERS)], axis=0)
        return w.astype(jnp.bfloat16)                # bf16 weights, f32 accumulation

    zeros = lambda d: jnp.zeros((N_LAYERS, 1, d), jnp.float32)
    ones = lambda d: jnp.ones((N_LAYERS, 1, d), jnp.float32)

    return {
        'tok_emb': jax.random.normal(keys[0], (VOCAB, H), jnp.float32) * 0.02,
        'pos_emb': jax.random.normal(keys[1], (S, H), jnp.float32) * 0.02,
        'emb_ln_g': jnp.ones((1, H), jnp.float32),
        'emb_ln_b': jnp.zeros((1, H), jnp.float32),
        'wq': stack_w(0, H, H), 'bq': zeros(H),
        'wk': stack_w(1, H, H), 'bk': zeros(H),
        'wv': stack_w(2, H, H), 'bv': zeros(H),
        'wo': stack_w(3, H, H), 'bo': zeros(H),
        'ln1g': ones(H), 'ln1b': zeros(H),
        'w1': stack_w(4, H, FFN), 'b1': zeros(FFN),
        'w2': stack_w(5, FFN, H), 'b2': zeros(H),
        'ln2g': ones(H), 'ln2b': zeros(H),
    }


# ---- TextEncoder equivalent -----------------------------------------------------
class TextEncoderPallas:
    """Pallas stand-in for TextEncoder.forward."""

    def __init__(self, params):
        self.params = params
        self.hidden_dim = H
        self.max_seq_length = S

    def forward(self, text_embeds):
        input_ids = text_embeds['input_ids']
        attention_mask = text_embeds['attention_mask']
        tok = encode(self.params, input_ids, attention_mask)
        return {'input_ids': input_ids,
                'attention_mask': attention_mask,
                'token_embeddings': tok}

    def get_word_embedding_dimension(self) -> int:
        return self.hidden_dim


if __name__ == "__main__":
    key = jax.random.PRNGKey(0)
    pkey, ikey = jax.random.split(key)

    params = init_params(pkey)
    input_ids = jax.random.randint(ikey, (B, S), 0, VOCAB, dtype=jnp.int32)
    lengths = jnp.array([S, 5], dtype=jnp.int32)
    attention_mask = (jnp.arange(S)[None, :] < lengths[:, None]).astype(jnp.int32)

    enc = TextEncoderPallas(params)
    feats = enc.forward({'input_ids': input_ids, 'attention_mask': attention_mask})
    tok = jax.block_until_ready(feats['token_embeddings'])

    assert tok.shape == (B, S, H) and tok.dtype == jnp.float32
    assert bool(jnp.all(jnp.isfinite(tok)))
    print("KERNEL_OK")
</pallas_src>

<mosaic_0001>
module attributes {stable_mosaic.version = 11 : i64} {
  func.func @encoder_kernel(%arg0: i32, %arg1: memref<2x8x32xf32, #tpu.memory_space<vmem>>, %arg2: memref<2x1x8xf32, #tpu.memory_space<vmem>>, %arg3: memref<1x32xf32, #tpu.memory_space<vmem>>, %arg4: memref<1x32xf32, #tpu.memory_space<vmem>>, %arg5: memref<1x32x32xbf16, #tpu.memory_space<vmem>>, %arg6: memref<1x1x32xf32, #tpu.memory_space<vmem>>, %arg7: memref<1x32x32xbf16, #tpu.memory_space<vmem>>, %arg8: memref<1x1x32xf32, #tpu.memory_space<vmem>>, %arg9: memref<1x32x32xbf16, #tpu.memory_space<vmem>>, %arg10: memref<1x1x32xf32, #tpu.memory_space<vmem>>, %arg11: memref<1x32x32xbf16, #tpu.memory_space<vmem>>, %arg12: memref<1x1x32xf32, #tpu.memory_space<vmem>>, %arg13: memref<1x1x32xf32, #tpu.memory_space<vmem>>, %arg14: memref<1x1x32xf32, #tpu.memory_space<vmem>>, %arg15: memref<1x32x128xbf16, #tpu.memory_space<vmem>>, %arg16: memref<1x1x128xf32, #tpu.memory_space<vmem>>, %arg17: memref<1x128x32xbf16, #tpu.memory_space<vmem>>, %arg18: memref<1x1x32xf32, #tpu.memory_space<vmem>>, %arg19: memref<1x1x32xf32, #tpu.memory_space<vmem>>, %arg20: memref<1x1x32xf32, #tpu.memory_space<vmem>>, %arg21: memref<2x8x32xf32, #tpu.memory_space<vmem>>, %arg22: memref<2x8x32xf32, #tpu.memory_space<vmem>>) attributes {dimension_semantics = [#tpu.dimension_semantics<arbitrary>], iteration_bounds = array<i64: 2>, scalar_prefetch = 0 : i64, scratch_operands = 1 : i64, tpu.core_type = #tpu.core_type<tc>, window_params = [{pipeline_mode = #tpu.pipeline_mode<synchronous>, transform_indices = @transform_0, window_bounds = array<i64: 2, 8, 32>}, {pipeline_mode = #tpu.pipeline_mode<synchronous>, transform_indices = @transform_1, window_bounds = array<i64: 2, 1, 8>}, {pipeline_mode = #tpu.pipeline_mode<synchronous>, transform_indices = @transform_2, window_bounds = array<i64: 1, 32>}, {pipeline_mode = #tpu.pipeline_mode<synchronous>, transform_indices = @transform_3, window_bounds = array<i64: 1, 32>}, {transform_indices = @transform_4, window_bounds = array<i64: 1, 32, 32>}, {transform_indices = @transform_5, window_bounds = array<i64: 1, 1, 32>}, {transform_indices = @transform_6, window_bounds = array<i64: 1, 32, 32>}, {transform_indices = @transform_7, window_bounds = array<i64: 1, 1, 32>}, {transform_indices = @transform_8, window_bounds = array<i64: 1, 32, 32>}, {transform_indices = @transform_9, window_bounds = array<i64: 1, 1, 32>}, {transform_indices = @transform_10, window_bounds = array<i64: 1, 32, 32>}, {transform_indices = @transform_11, window_bounds = array<i64: 1, 1, 32>}, {transform_indices = @transform_12, window_bounds = array<i64: 1, 1, 32>}, {transform_indices = @transform_13, window_bounds = array<i64: 1, 1, 32>}, {transform_indices = @transform_14, window_bounds = array<i64: 1, 32, 128>}, {transform_indices = @transform_15, window_bounds = array<i64: 1, 1, 128>}, {transform_indices = @transform_16, window_bounds = array<i64: 1, 128, 32>}, {transform_indices = @transform_17, window_bounds = array<i64: 1, 1, 32>}, {transform_indices = @transform_18, window_bounds = array<i64: 1, 1, 32>}, {transform_indices = @transform_19, window_bounds = array<i64: 1, 1, 32>}, {pipeline_mode = #tpu.pipeline_mode<synchronous>, transform_indices = @transform_20, window_bounds = array<i64: 2, 8, 32>}]} {
    %c0_i32 = arith.constant 0 : i32
    %0 = arith.cmpi eq, %arg0, %c0_i32 : i32
    %1 = arith.extui %0 : i1 to i32
    %c0_i32_0 = arith.constant 0 : i32
    %2 = arith.cmpi ne, %1, %c0_i32_0 : i32
    scf.if %2 {
      %c0_94 = arith.constant 0 : index
      %c0_95 = arith.constant 0 : index
      %c0_96 = arith.constant 0 : index
      %221 = vector.load %arg1[%c0_94, %c0_95, %c0_96] : memref<2x8x32xf32, #tpu.memory_space<vmem>>, vector<2x8x32xf32>
      %c0_97 = arith.constant 0 : index
      %c0_98 = arith.constant 0 : index
      %222 = vector.load %arg3[%c0_97, %c0_98] : memref<1x32xf32, #tpu.memory_space<vmem>>, vector<1x32xf32>
      %c0_99 = arith.constant 0 : index
      %c0_100 = arith.constant 0 : index
      %223 = vector.load %arg4[%c0_99, %c0_100] : memref<1x32xf32, #tpu.memory_space<vmem>>, vector<1x32xf32>
      %cst_101 = arith.constant dense<0.000000e+00> : vector<2x8xf32>
      %224 = vector.multi_reduction <add>, %221, %cst_101 [2] : vector<2x8x32xf32> to vector<2x8xf32>
      %225 = vector.shape_cast %224 : vector<2x8xf32> to vector<2x8x1xf32>
      %cst_102 = arith.constant 3.200000e+01 : f32
      %226 = vector.broadcast %cst_102 : f32 to vector<2x8x1xf32>
      %227 = arith.divf %225, %226 : vector<2x8x1xf32>
      %228 = vector.broadcast %227 : vector<2x8x1xf32> to vector<2x8x32xf32>
      %229 = arith.subf %221, %228 : vector<2x8x32xf32>
      %230 = arith.mulf %229, %229 : vector<2x8x32xf32>
      %cst_103 = arith.constant dense<0.000000e+00> : vector<2x8xf32>
      %231 = vector.multi_reduction <add>, %230, %cst_103 [2] : vector<2x8x32xf32> to vector<2x8xf32>
      %232 = vector.shape_cast %231 : vector<2x8xf32> to vector<2x8x1xf32>
      %cst_104 = arith.constant 3.200000e+01 : f32
      %233 = vector.broadcast %cst_104 : f32 to vector<2x8x1xf32>
      %234 = arith.divf %232, %233 : vector<2x8x1xf32>
      %235 = vector.broadcast %227 : vector<2x8x1xf32> to vector<2x8x32xf32>
      %236 = arith.subf %221, %235 : vector<2x8x32xf32>
      %cst_105 = arith.constant 9.99999996E-13 : f32
      %237 = vector.broadcast %cst_105 : f32 to vector<2x8x1xf32>
      %238 = arith.addf %234, %237 : vector<2x8x1xf32>
      %239 = math.rsqrt %238 : vector<2x8x1xf32>
      %240 = vector.broadcast %239 : vector<2x8x1xf32> to vector<2x8x32xf32>
      %241 = arith.mulf %236, %240 : vector<2x8x32xf32>
      %242 = vector.shape_cast %222 : vector<1x32xf32> to vector<1x1x32xf32>
      %243 = vector.broadcast %242 : vector<1x1x32xf32> to vector<2x8x32xf32>
      %244 = arith.mulf %241, %243 : vector<2x8x32xf32>
      %245 = vector.shape_cast %223 : vector<1x32xf32> to vector<1x1x32xf32>
      %246 = vector.broadcast %245 : vector<1x1x32xf32> to vector<2x8x32xf32>
      %247 = arith.addf %244, %246 : vector<2x8x32xf32>
      %c0_106 = arith.constant 0 : index
      %c0_107 = arith.constant 0 : index
      %c0_108 = arith.constant 0 : index
      %248 = vector.load %arg22[%c0_106, %c0_107, %c0_108] : memref<2x8x32xf32, #tpu.memory_space<vmem>>, vector<2x8x32xf32>
      tpu.vector_store %arg22[%c0_106, %c0_107, %c0_108], %247 {strides = array<i32>} : memref<2x8x32xf32, #tpu.memory_space<vmem>>, vector<2x8x32xf32>,
    } else {
    }
    %c0 = arith.constant 0 : index
    %c0_1 = arith.constant 0 : index
    %c0_2 = arith.constant 0 : index
    %3 = vector.load %arg22[%c0, %c0_1, %c0_2] : memref<2x8x32xf32, #tpu.memory_space<vmem>>, vector<2x8x32xf32>
    %4 = vector.shape_cast %3 : vector<2x8x32xf32> to vector<16x32xf32>
    %5 = arith.truncf %4 : vector<16x32xf32> to vector<16x32xbf16>
    %c0_3 = arith.constant 0 : index
    %c0_4 = arith.constant 0 : index
    %c0_5 = arith.constant 0 : index
    %6 = vector.load %arg5[%c0_3, %c0_4, %c0_5] : memref<1x32x32xbf16, #tpu.memory_space<vmem>>, vector<1x32x32xbf16>
    %7 = vector.shape_cast %6 : vector<1x32x32xbf16> to vector<32x32xbf16>
    %cst = arith.constant dense<0.000000e+00> : vector<16x32xf32>
    %8 = tpu.matmul %5, %7, %cst {dimension_numbers = #tpu.dot_dimension_numbers<[1], [0], [0], [1], [0, 0, 1, 1], [], []>} : vector<16x32xbf16>, vector<32x32xbf16>, vector<16x32xf32> -> vector<16x32xf32>
    %c0_6 = arith.constant 0 : index
    %c0_7 = arith.constant 0 : index
    %c0_8 = arith.constant 0 : index
    %9 = vector.load %arg6[%c0_6, %c0_7, %c0_8] : memref<1x1x32xf32, #tpu.memory_space<vmem>>, vector<1x1x32xf32>
    %10 = vector.shape_cast %9 : vector<1x1x32xf32> to vector<1x32xf32>
    %11 = vector.broadcast %10 : vector<1x32xf32> to vector<16x32xf32>
    %12 = arith.addf %8, %11 : vector<16x32xf32>
    %13 = vector.shape_cast %12 : vector<16x32xf32> to vector<2x8x32xf32>
    %c0_9 = arith.constant 0 : index
    %c0_10 = arith.constant 0 : index
    %c0_11 = arith.constant 0 : index
    %14 = vector.load %arg7[%c0_9, %c0_10, %c0_11] : memref<1x32x32xbf16, #tpu.memory_space<vmem>>, vector<1x32x32xbf16>
    %15 = vector.shape_cast %14 : vector<1x32x32xbf16> to vector<32x32xbf16>
    %cst_12 = arith.constant dense<0.000000e+00> : vector<16x32xf32>
    %16 = tpu.matmul %5, %15, %cst_12 {dimension_numbers = #tpu.dot_dimension_numbers<[1], [0], [0], [1], [0, 0, 1, 1], [], []>} : vector<16x32xbf16>, vector<32x32xbf16>, vector<16x32xf32> -> vector<16x32xf32>
    %c0_13 = arith.constant 0 : index
    %c0_14 = arith.constant 0 : index
    %c0_15 = arith.constant 0 : index
    %17 = vector.load %arg8[%c0_13, %c0_14, %c0_15] : memref<1x1x32xf32, #tpu.memory_space<vmem>>, vector<1x1x32xf32>
    %18 = vector.shape_cast %17 : vector<1x1x32xf32> to vector<1x32xf32>
    %19 = vector.broadcast %18 : vector<1x32xf32> to vector<16x32xf32>
    %20 = arith.addf %16, %19 : vector<16x32xf32>
    %21 = vector.shape_cast %20 : vector<16x32xf32> to vector<2x8x32xf32>
    %c0_16 = arith.constant 0 : index
    %c0_17 = arith.constant 0 : index
    %c0_18 = arith.constant 0 : index
    %22 = vector.load %arg9[%c0_16, %c0_17, %c0_18] : memref<1x32x32xbf16, #tpu.memory_space<vmem>>, vector<1x32x32xbf16>
    %23 = vector.shape_cast %22 : vector<1x32x32xbf16> to vector<32x32xbf16>
    %cst_19 = arith.constant dense<0.000000e+00> : vector<16x32xf32>
    %24 = tpu.matmul %5, %23, %cst_19 {dimension_numbers = #tpu.dot_dimension_numbers<[1], [0], [0], [1], [0, 0, 1, 1], [], []>} : vector<16x32xbf16>, vector<32x32xbf16>, vector<16x32xf32> -> vector<16x32xf32>
    %c0_20 = arith.constant 0 : index
    %c0_21 = arith.constant 0 : index
    %c0_22 = arith.constant 0 : index
    %25 = vector.load %arg10[%c0_20, %c0_21, %c0_22] : memref<1x1x32xf32, #tpu.memory_space<vmem>>, vector<1x1x32xf32>
    %26 = vector.shape_cast %25 : vector<1x1x32xf32> to vector<1x32xf32>
    %27 = vector.broadcast %26 : vector<1x32xf32> to vector<16x32xf32>
    %28 = arith.addf %24, %27 : vector<16x32xf32>
    %29 = vector.shape_cast %28 : vector<16x32xf32> to vector<2x8x32xf32>
    %cst_23 = arith.constant 0.353553385 : f32
    %30 = vector.broadcast %cst_23 : f32 to vector<2x8x32xf32>
    %31 = arith.mulf %13, %30 : vector<2x8x32xf32>
    %c0_24 = arith.constant 0 : index
    %c0_25 = arith.constant 0 : index
    %c0_26 = arith.constant 0 : index
    %32 = vector.load %arg2[%c0_24, %c0_25, %c0_26] : memref<2x1x8xf32, #tpu.memory_space<vmem>>, vector<2x1x8xf32>
    %33 = vector.extract_strided_slice %31 {offsets = [0, 0, 0], sizes = [2, 8, 8], strides = [1, 1, 1]} : vector<2x8x32xf32> to vector<2x8x8xf32>
    %34 = arith.truncf %33 : vector<2x8x8xf32> to vector<2x8x8xbf16>
    %35 = vector.extract_strided_slice %21 {offsets = [0, 0, 0], sizes = [2, 8, 8], strides = [1, 1, 1]} : vector<2x8x32xf32> to vector<2x8x8xf32>
    %36 = arith.truncf %35 : vector<2x8x8xf32> to vector<2x8x8xbf16>
    %37 = vector.extract_strided_slice %29 {offsets = [0, 0, 0], sizes = [2, 8, 8], strides = [1, 1, 1]} : vector<2x8x32xf32> to vector<2x8x8xf32>
    %38 = arith.truncf %37 : vector<2x8x8xf32> to vector<2x8x8xbf16>
    "tpu.trace_start"() <{level = 10 : i32, message = "bqd,bkd->bqk"}> : () -> ()
    %cst_27 = arith.constant dense<0.000000e+00> : vector<2x8x8xf32>
    %39 = tpu.matmul %34, %36, %cst_27 {dimension_numbers = #tpu.dot_dimension_numbers<[2], [2], [1], [1], [0, 0, 0, 1, 1, 1], [0], [0]>} : vector<2x8x8xbf16>, vector<2x8x8xbf16>, vector<2x8x8xf32> -> vector<2x8x8xf32>
    "tpu.trace_stop"() : () -> ()
    %40 = vector.broadcast %32 : vector<2x1x8xf32> to vector<2x8x8xf32>
    %41 = arith.addf %39, %40 : vector<2x8x8xf32>
    %cst_28 = arith.constant dense<0xFF800000> : vector<2x8xf32>
    %42 = vector.multi_reduction <maximumf>, %41, %cst_28 [2] : vector<2x8x8xf32> to vector<2x8xf32>
    %43 = vector.shape_cast %42 : vector<2x8xf32> to vector<2x8x1xf32>
    %44 = vector.broadcast %43 : vector<2x8x1xf32> to vector<2x8x8xf32>
    %45 = arith.subf %41, %44 : vector<2x8x8xf32>
    %46 = math.exp %45 : vector<2x8x8xf32>
    %cst_29 = arith.constant dense<0.000000e+00> : vector<2x8xf32>
    %47 = vector.multi_reduction <add>, %46, %cst_29 [2] : vector<2x8x8xf32> to vector<2x8xf32>
    %48 = vector.shape_cast %47 : vector<2x8xf32> to vector<2x8x1xf32>
    %49 = tpu.reciprocal %48 {approx = true} : vector<2x8x1xf32> -> vector<2x8x1xf32>
    %50 = vector.broadcast %49 : vector<2x8x1xf32> to vector<2x8x8xf32>
    %51 = arith.mulf %46, %50 : vector<2x8x8xf32>
    %52 = arith.truncf %51 : vector<2x8x8xf32> to vector<2x8x8xbf16>
    "tpu.trace_start"() <{level = 10 : i32, message = "bqk,bkd->bqd"}> : () -> ()
    %cst_30 = arith.constant dense<0.000000e+00> : vector<2x8x8xf32>
    %53 = tpu.matmul %52, %38, %cst_30 {dimension_numbers = #tpu.dot_dimension_numbers<[2], [1], [1], [2], [0, 0, 0, 1, 1, 2], [0], [0]>} : vector<2x8x8xbf16>, vector<2x8x8xbf16>, vector<2x8x8xf32> -> vector<2x8x8xf32>
    "tpu.trace_stop"() : () -> ()
    %54 = vector.extract_strided_slice %31 {offsets = [0, 0, 8], sizes = [2, 8, 8], strides = [1, 1, 1]} : vector<2x8x32xf32> to vector<2x8x8xf32>
    %55 = arith.truncf %54 : vector<2x8x8xf32> to vector<2x8x8xbf16>
    %56 = vector.extract_strided_slice %21 {offsets = [0, 0, 8], sizes = [2, 8, 8], strides = [1, 1, 1]} : vector<2x8x32xf32> to vector<2x8x8xf32>
    %57 = arith.truncf %56 : vector<2x8x8xf32> to vector<2x8x8xbf16>
    %58 = vector.extract_strided_slice %29 {offsets = [0, 0, 8], sizes = [2, 8, 8], strides = [1, 1, 1]} : vector<2x8x32xf32> to vector<2x8x8xf32>
    %59 = arith.truncf %58 : vector<2x8x8xf32> to vector<2x8x8xbf16>
    "tpu.trace_start"() <{level = 10 : i32, message = "bqd,bkd->bqk"}> : () -> ()
    %cst_31 = arith.constant dense<0.000000e+00> : vector<2x8x8xf32>
    %60 = tpu.matmul %55, %57, %cst_31 {dimension_numbers = #tpu.dot_dimension_numbers<[2], [2], [1], [1], [0, 0, 0, 1, 1, 1], [0], [0]>} : vector<2x8x8xbf16>, vector<2x8x8xbf16>, vector<2x8x8xf32> -> vector<2x8x8xf32>
    "tpu.trace_stop"() : () -> ()
    %61 = vector.broadcast %32 : vector<2x1x8xf32> to vector<2x8x8xf32>
    %62 = arith.addf %60, %61 : vector<2x8x8xf32>
    %cst_32 = arith.constant dense<0xFF800000> : vector<2x8xf32>
    %63 = vector.multi_reduction <maximumf>, %62, %cst_32 [2] : vector<2x8x8xf32> to vector<2x8xf32>
    %64 = vector.shape_cast %63 : vector<2x8xf32> to vector<2x8x1xf32>
    %65 = vector.broadcast %64 : vector<2x8x1xf32> to vector<2x8x8xf32>
    %66 = arith.subf %62, %65 : vector<2x8x8xf32>
    %67 = math.exp %66 : vector<2x8x8xf32>
    %cst_33 = arith.constant dense<0.000000e+00> : vector<2x8xf32>
    %68 = vector.multi_reduction <add>, %67, %cst_33 [2] : vector<2x8x8xf32> to vector<2x8xf32>
    %69 = vector.shape_cast %68 : vector<2x8xf32> to vector<2x8x1xf32>
    %70 = tpu.reciprocal %69 {approx = true} : vector<2x8x1xf32> -> vector<2x8x1xf32>
    %71 = vector.broadcast %70 : vector<2x8x1xf32> to vector<2x8x8xf32>
    %72 = arith.mulf %67, %71 : vector<2x8x8xf32>
    %73 = arith.truncf %72 : vector<2x8x8xf32> to vector<2x8x8xbf16>
    "tpu.trace_start"() <{level = 10 : i32, message = "bqk,bkd->bqd"}> : () -> ()
    %cst_34 = arith.constant dense<0.000000e+00> : vector<2x8x8xf32>
    %74 = tpu.matmul %73, %59, %cst_34 {dimension_numbers = #tpu.dot_dimension_numbers<[2], [1], [1], [2], [0, 0, 0, 1, 1, 2], [0], [0]>} : vector<2x8x8xbf16>, vector<2x8x8xbf16>, vector<2x8x8xf32> -> vector<2x8x8xf32>
    "tpu.trace_stop"() : () -> ()
    %75 = vector.extract_strided_slice %31 {offsets = [0, 0, 16], sizes = [2, 8, 8], strides = [1, 1, 1]} : vector<2x8x32xf32> to vector<2x8x8xf32>
    %76 = arith.truncf %75 : vector<2x8x8xf32> to vector<2x8x8xbf16>
    %77 = vector.extract_strided_slice %21 {offsets = [0, 0, 16], sizes = [2, 8, 8], strides = [1, 1, 1]} : vector<2x8x32xf32> to vector<2x8x8xf32>
    %78 = arith.truncf %77 : vector<2x8x8xf32> to vector<2x8x8xbf16>
    %79 = vector.extract_strided_slice %29 {offsets = [0, 0, 16], sizes = [2, 8, 8], strides = [1, 1, 1]} : vector<2x8x32xf32> to vector<2x8x8xf32>
    %80 = arith.truncf %79 : vector<2x8x8xf32> to vector<2x8x8xbf16>
    "tpu.trace_start"() <{level = 10 : i32, message = "bqd,bkd->bqk"}> : () -> ()
    %cst_35 = arith.constant dense<0.000000e+00> : vector<2x8x8xf32>
    %81 = tpu.matmul %76, %78, %cst_35 {dimension_numbers = #tpu.dot_dimension_numbers<[2], [2], [1], [1], [0, 0, 0, 1, 1, 1], [0], [0]>} : vector<2x8x8xbf16>, vector<2x8x8xbf16>, vector<2x8x8xf32> -> vector<2x8x8xf32>
    "tpu.trace_stop"() : () -> ()
    %82 = vector.broadcast %32 : vector<2x1x8xf32> to vector<2x8x8xf32>
    %83 = arith.addf %81, %82 : vector<2x8x8xf32>
    %cst_36 = arith.constant dense<0xFF800000> : vector<2x8xf32>
    %84 = vector.multi_reduction <maximumf>, %83, %cst_36 [2] : vector<2x8x8xf32> to vector<2x8xf32>
    %85 = vector.shape_cast %84 : vector<2x8xf32> to vector<2x8x1xf32>
    %86 = vector.broadcast %85 : vector<2x8x1xf32> to vector<2x8x8xf32>
    %87 = arith.subf %83, %86 : vector<2x8x8xf32>
    %88 = math.exp %87 : vector<2x8x8xf32>
    %cst_37 = arith.constant dense<0.000000e+00> : vector<2x8xf32>
    %89 = vector.multi_reduction <add>, %88, %cst_37 [2] : vector<2x8x8xf32> to vector<2x8xf32>
    %90 = vector.shape_cast %89 : vector<2x8xf32> to vector<2x8x1xf32>
    %91 = tpu.reciprocal %90 {approx = true} : vector<2x8x1xf32> -> vector<2x8x1xf32>
    %92 = vector.broadcast %91 : vector<2x8x1xf32> to vector<2x8x8xf32>
    %93 = arith.mulf %88, %92 : vector<2x8x8xf32>
    %94 = arith.truncf %93 : vector<2x8x8xf32> to vector<2x8x8xbf16>
    "tpu.trace_start"() <{level = 10 : i32, message = "bqk,bkd->bqd"}> : () -> ()
    %cst_38 = arith.constant dense<0.000000e+00> : vector<2x8x8xf32>
    %95 = tpu.matmul %94, %80, %cst_38 {dimension_numbers = #tpu.dot_dimension_numbers<[2], [1], [1], [2], [0, 0, 0, 1, 1, 2], [0], [0]>} : vector<2x8x8xbf16>, vector<2x8x8xbf16>, vector<2x8x8xf32> -> vector<2x8x8xf32>
    "tpu.trace_stop"() : () -> ()
    %96 = vector.extract_strided_slice %31 {offsets = [0, 0, 24], sizes = [2, 8, 8], strides = [1, 1, 1]} : vector<2x8x32xf32> to vector<2x8x8xf32>
    %97 = arith.truncf %96 : vector<2x8x8xf32> to vector<2x8x8xbf16>
    %98 = vector.extract_strided_slice %21 {offsets = [0, 0, 24], sizes = [2, 8, 8], strides = [1, 1, 1]} : vector<2x8x32xf32> to vector<2x8x8xf32>
    %99 = arith.truncf %98 : vector<2x8x8xf32> to vector<2x8x8xbf16>
    %100 = vector.extract_strided_slice %29 {offsets = [0, 0, 24], sizes = [2, 8, 8], strides = [1, 1, 1]} : vector<2x8x32xf32> to vector<2x8x8xf32>
    %101 = arith.truncf %100 : vector<2x8x8xf32> to vector<2x8x8xbf16>
    "tpu.trace_start"() <{level = 10 : i32, message = "bqd,bkd->bqk"}> : () -> ()
    %cst_39 = arith.constant dense<0.000000e+00> : vector<2x8x8xf32>
    %102 = tpu.matmul %97, %99, %cst_39 {dimension_numbers = #tpu.dot_dimension_numbers<[2], [2], [1], [1], [0, 0, 0, 1, 1, 1], [0], [0]>} : vector<2x8x8xbf16>, vector<2x8x8xbf16>, vector<2x8x8xf32> -> vector<2x8x8xf32>
    "tpu.trace_stop"() : () -> ()
    %103 = vector.broadcast %32 : vector<2x1x8xf32> to vector<2x8x8xf32>
    %104 = arith.addf %102, %103 : vector<2x8x8xf32>
    %cst_40 = arith.constant dense<0xFF800000> : vector<2x8xf32>
    %105 = vector.multi_reduction <maximumf>, %104, %cst_40 [2] : vector<2x8x8xf32> to vector<2x8xf32>
    %106 = vector.shape_cast %105 : vector<2x8xf32> to vector<2x8x1xf32>
    %107 = vector.broadcast %106 : vector<2x8x1xf32> to vector<2x8x8xf32>
    %108 = arith.subf %104, %107 : vector<2x8x8xf32>
    %109 = math.exp %108 : vector<2x8x8xf32>
    %cst_41 = arith.constant dense<0.000000e+00> : vector<2x8xf32>
    %110 = vector.multi_reduction <add>, %109, %cst_41 [2] : vector<2x8x8xf32> to vector<2x8xf32>
    %111 = vector.shape_cast %110 : vector<2x8xf32> to vector<2x8x1xf32>
    %112 = tpu.reciprocal %111 {approx = true} : vector<2x8x1xf32> -> vector<2x8x1xf32>
    %113 = vector.broadcast %112 : vector<2x8x1xf32> to vector<2x8x8xf32>
    %114 = arith.mulf %109, %113 : vector<2x8x8xf32>
    %115 = arith.truncf %114 : vector<2x8x8xf32> to vector<2x8x8xbf16>
    "tpu.trace_start"() <{level = 10 : i32, message = "bqk,bkd->bqd"}> : () -> ()
    %cst_42 = arith.constant dense<0.000000e+00> : vector<2x8x8xf32>
    %116 = tpu.matmul %115, %101, %cst_42 {dimension_numbers = #tpu.dot_dimension_numbers<[2], [1], [1], [2], [0, 0, 0, 1, 1, 2], [0], [0]>} : vector<2x8x8xbf16>, vector<2x8x8xbf16>, vector<2x8x8xf32> -> vector<2x8x8xf32>
    "tpu.trace_stop"() : () -> ()
    %117 = tpu.concatenate %53, %74, %95, %116 in 2 : vector<2x8x8xf32>, vector<2x8x8xf32>, vector<2x8x8xf32>, vector<2x8x8xf32> -> vector<2x8x32xf32>
    %118 = vector.shape_cast %117 : vector<2x8x32xf32> to vector<16x32xf32>
    %119 = arith.truncf %118 : vector<16x32xf32> to vector<16x32xbf16>
    %c0_43 = arith.constant 0 : index
    %c0_44 = arith.constant 0 : index
    %c0_45 = arith.constant 0 : index
    %120 = vector.load %arg11[%c0_43, %c0_44, %c0_45] : memref<1x32x32xbf16, #tpu.memory_space<vmem>>, vector<1x32x32xbf16>
    %121 = vector.shape_cast %120 : vector<1x32x32xbf16> to vector<32x32xbf16>
    %cst_46 = arith.constant dense<0.000000e+00> : vector<16x32xf32>
    %122 = tpu.matmul %119, %121, %cst_46 {dimension_numbers = #tpu.dot_dimension_numbers<[1], [0], [0], [1], [0, 0, 1, 1], [], []>} : vector<16x32xbf16>, vector<32x32xbf16>, vector<16x32xf32> -> vector<16x32xf32>
    %c0_47 = arith.constant 0 : index
    %c0_48 = arith.constant 0 : index
    %c0_49 = arith.constant 0 : index
    %123 = vector.load %arg12[%c0_47, %c0_48, %c0_49] : memref<1x1x32xf32, #tpu.memory_space<vmem>>, vector<1x1x32xf32>
    %124 = vector.shape_cast %123 : vector<1x1x32xf32> to vector<1x32xf32>
    %125 = vector.broadcast %124 : vector<1x32xf32> to vector<16x32xf32>
    %126 = arith.addf %122, %125 : vector<16x32xf32>
    %127 = vector.shape_cast %126 : vector<16x32xf32> to vector<2x8x32xf32>
    %128 = arith.addf %3, %127 : vector<2x8x32xf32>
    %c0_50 = arith.constant 0 : index
    %c0_51 = arith.constant 0 : index
    %c0_52 = arith.constant 0 : index
    %129 = vector.load %arg13[%c0_50, %c0_51, %c0_52] : memref<1x1x32xf32, #tpu.memory_space<vmem>>, vector<1x1x32xf32>
    %130 = vector.shape_cast %129 : vector<1x1x32xf32> to vector<1x32xf32>
    %c0_53 = arith.constant 0 : index
    %c0_54 = arith.constant 0 : index
    %c0_55 = arith.constant 0 : index
    %131 = vector.load %arg14[%c0_53, %c0_54, %c0_55] : memref<1x1x32xf32, #tpu.memory_space<vmem>>, vector<1x1x32xf32>
    %132 = vector.shape_cast %131 : vector<1x1x32xf32> to vector<1x32xf32>
    %cst_56 = arith.constant dense<0.000000e+00> : vector<2x8xf32>
    %133 = vector.multi_reduction <add>, %128, %cst_56 [2] : vector<2x8x32xf32> to vector<2x8xf32>
    %134 = vector.shape_cast %133 : vector<2x8xf32> to vector<2x8x1xf32>
    %cst_57 = arith.constant 3.200000e+01 : f32
    %135 = vector.broadcast %cst_57 : f32 to vector<2x8x1xf32>
    %136 = arith.divf %134, %135 : vector<2x8x1xf32>
    %137 = vector.broadcast %136 : vector<2x8x1xf32> to vector<2x8x32xf32>
    %138 = arith.subf %128, %137 : vector<2x8x32xf32>
    %139 = arith.mulf %138, %138 : vector<2x8x32xf32>
    %cst_58 = arith.constant dense<0.000000e+00> : vector<2x8xf32>
    %140 = vector.multi_reduction <add>, %139, %cst_58 [2] : vector<2x8x32xf32> to vector<2x8xf32>
    %141 = vector.shape_cast %140 : vector<2x8xf32> to vector<2x8x1xf32>
    %cst_59 = arith.constant 3.200000e+01 : f32
    %142 = vector.broadcast %cst_59 : f32 to vector<2x8x1xf32>
    %143 = arith.divf %141, %142 : vector<2x8x1xf32>
    %144 = vector.broadcast %136 : vector<2x8x1xf32> to vector<2x8x32xf32>
    %145 = arith.subf %128, %144 : vector<2x8x32xf32>
    %cst_60 = arith.constant 9.99999996E-13 : f32
    %146 = vector.broadcast %cst_60 : f32 to vector<2x8x1xf32>
    %147 = arith.addf %143, %146 : vector<2x8x1xf32>
    %148 = math.rsqrt %147 : vector<2x8x1xf32>
    %149 = vector.broadcast %148 : vector<2x8x1xf32> to vector<2x8x32xf32>
    %150 = arith.mulf %145, %149 : vector<2x8x32xf32>
    %151 = vector.shape_cast %130 : vector<1x32xf32> to vector<1x1x32xf32>
    %152 = vector.broadcast %151 : vector<1x1x32xf32> to vector<2x8x32xf32>
    %153 = arith.mulf %150, %152 : vector<2x8x32xf32>
    %154 = vector.shape_cast %132 : vector<1x32xf32> to vector<1x1x32xf32>
    %155 = vector.broadcast %154 : vector<1x1x32xf32> to vector<2x8x32xf32>
    %156 = arith.addf %153, %155 : vector<2x8x32xf32>
    %157 = vector.shape_cast %156 : vector<2x8x32xf32> to vector<16x32xf32>
    %158 = arith.truncf %157 : vector<16x32xf32> to vector<16x32xbf16>
    %c0_61 = arith.constant 0 : index
    %c0_62 = arith.constant 0 : index
    %c0_63 = arith.constant 0 : index
    %159 = vector.load %arg15[%c0_61, %c0_62, %c0_63] : memref<1x32x128xbf16, #tpu.memory_space<vmem>>, vector<1x32x128xbf16>
    %160 = vector.shape_cast %159 : vector<1x32x128xbf16> to vector<32x128xbf16>
    %cst_64 = arith.constant dense<0.000000e+00> : vector<16x128xf32>
    %161 = tpu.matmul %158, %160, %cst_64 {dimension_numbers = #tpu.dot_dimension_numbers<[1], [0], [0], [1], [0, 0, 1, 1], [], []>} : vector<16x32xbf16>, vector<32x128xbf16>, vector<16x128xf32> -> vector<16x128xf32>
    %c0_65 = arith.constant 0 : index
    %c0_66 = arith.constant 0 : index
    %c0_67 = arith.constant 0 : index
    %162 = vector.load %arg16[%c0_65, %c0_66, %c0_67] : memref<1x1x128xf32, #tpu.memory_space<vmem>>, vector<1x1x128xf32>
    %163 = vector.shape_cast %162 : vector<1x1x128xf32> to vector<1x128xf32>
    %164 = vector.broadcast %163 : vector<1x128xf32> to vector<16x128xf32>
    %165 = arith.addf %161, %164 : vector<16x128xf32>
    %166 = arith.mulf %165, %165 : vector<16x128xf32>
    %167 = arith.mulf %165, %166 : vector<16x128xf32>
    %cst_68 = arith.constant 4.471500e-02 : f32
    %168 = vector.broadcast %cst_68 : f32 to vector<16x128xf32>
    %169 = arith.mulf %168, %167 : vector<16x128xf32>
    %170 = arith.addf %165, %169 : vector<16x128xf32>
    %cst_69 = arith.constant 0.797884583 : f32
    %171 = vector.broadcast %cst_69 : f32 to vector<16x128xf32>
    %172 = arith.mulf %171, %170 : vector<16x128xf32>
    %173 = math.tanh %172 : vector<16x128xf32>
    %cst_70 = arith.constant 1.000000e+00 : f32
    %174 = vector.broadcast %cst_70 : f32 to vector<16x128xf32>
    %175 = arith.addf %174, %173 : vector<16x128xf32>
    %cst_71 = arith.constant 5.000000e-01 : f32
    %176 = vector.broadcast %cst_71 : f32 to vector<16x128xf32>
    %177 = arith.mulf %176, %175 : vector<16x128xf32>
    %178 = arith.mulf %165, %177 : vector<16x128xf32>
    %179 = arith.truncf %178 : vector<16x128xf32> to vector<16x128xbf16>
    %c0_72 = arith.constant 0 : index
    %c0_73 = arith.constant 0 : index
    %c0_74 = arith.constant 0 : index
    %180 = vector.load %arg17[%c0_72, %c0_73, %c0_74] : memref<1x128x32xbf16, #tpu.memory_space<vmem>>, vector<1x128x32xbf16>
    %181 = vector.shape_cast %180 : vector<1x128x32xbf16> to vector<128x32xbf16>
    %cst_75 = arith.constant dense<0.000000e+00> : vector<16x32xf32>
    %182 = tpu.matmul %179, %181, %cst_75 {dimension_numbers = #tpu.dot_dimension_numbers<[1], [0], [0], [1], [0, 0, 1, 1], [], []>} : vector<16x128xbf16>, vector<128x32xbf16>, vector<16x32xf32> -> vector<16x32xf32>
    %c0_76 = arith.constant 0 : index
    %c0_77 = arith.constant 0 : index
    %c0_78 = arith.constant 0 : index
    %183 = vector.load %arg18[%c0_76, %c0_77, %c0_78] : memref<1x1x32xf32, #tpu.memory_space<vmem>>, vector<1x1x32xf32>
    %184 = vector.shape_cast %183 : vector<1x1x32xf32> to vector<1x32xf32>
    %185 = vector.broadcast %184 : vector<1x32xf32> to vector<16x32xf32>
    %186 = arith.addf %182, %185 : vector<16x32xf32>
    %187 = vector.shape_cast %186 : vector<16x32xf32> to vector<2x8x32xf32>
    %188 = arith.addf %156, %187 : vector<2x8x32xf32>
    %c0_79 = arith.constant 0 : index
    %c0_80 = arith.constant 0 : index
    %c0_81 = arith.constant 0 : index
    %189 = vector.load %arg19[%c0_79, %c0_80, %c0_81] : memref<1x1x32xf32, #tpu.memory_space<vmem>>, vector<1x1x32xf32>
    %190 = vector.shape_cast %189 : vector<1x1x32xf32> to vector<1x32xf32>
    %c0_82 = arith.constant 0 : index
    %c0_83 = arith.constant 0 : index
    %c0_84 = arith.constant 0 : index
    %191 = vector.load %arg20[%c0_82, %c0_83, %c0_84] : memref<1x1x32xf32, #tpu.memory_space<vmem>>, vector<1x1x32xf32>
    %192 = vector.shape_cast %191 : vector<1x1x32xf32> to vector<1x32xf32>
    %cst_85 = arith.constant dense<0.000000e+00> : vector<2x8xf32>
    %193 = vector.multi_reduction <add>, %188, %cst_85 [2] : vector<2x8x32xf32> to vector<2x8xf32>
    %194 = vector.shape_cast %193 : vector<2x8xf32> to vector<2x8x1xf32>
    %cst_86 = arith.constant 3.200000e+01 : f32
    %195 = vector.broadcast %cst_86 : f32 to vector<2x8x1xf32>
    %196 = arith.divf %194, %195 : vector<2x8x1xf32>
    %197 = vector.broadcast %196 : vector<2x8x1xf32> to vector<2x8x32xf32>
    %198 = arith.subf %188, %197 : vector<2x8x32xf32>
    %199 = arith.mulf %198, %198 : vector<2x8x32xf32>
    %cst_87 = arith.constant dense<0.000000e+00> : vector<2x8xf32>
    %200 = vector.multi_reduction <add>, %199, %cst_87 [2] : vector<2x8x32xf32> to vector<2x8xf32>
    %201 = vector.shape_cast %200 : vector<2x8xf32> to vector<2x8x1xf32>
    %cst_88 = arith.constant 3.200000e+01 : f32
    %202 = vector.broadcast %cst_88 : f32 to vector<2x8x1xf32>
    %203 = arith.divf %201, %202 : vector<2x8x1xf32>
    %204 = vector.broadcast %196 : vector<2x8x1xf32> to vector<2x8x32xf32>
    %205 = arith.subf %188, %204 : vector<2x8x32xf32>
    %cst_89 = arith.constant 9.99999996E-13 : f32
    %206 = vector.broadcast %cst_89 : f32 to vector<2x8x1xf32>
    %207 = arith.addf %203, %206 : vector<2x8x1xf32>
    %208 = math.rsqrt %207 : vector<2x8x1xf32>
    %209 = vector.broadcast %208 : vector<2x8x1xf32> to vector<2x8x32xf32>
    %210 = arith.mulf %205, %209 : vector<2x8x32xf32>
    %211 = vector.shape_cast %190 : vector<1x32xf32> to vector<1x1x32xf32>
    %212 = vector.broadcast %211 : vector<1x1x32xf32> to vector<2x8x32xf32>
    %213 = arith.mulf %210, %212 : vector<2x8x32xf32>
    %214 = vector.shape_cast %192 : vector<1x32xf32> to vector<1x1x32xf32>
    %215 = vector.broadcast %214 : vector<1x1x32xf32> to vector<2x8x32xf32>
    %216 = arith.addf %213, %215 : vector<2x8x32xf32>
    %c0_90 = arith.constant 0 : index
    %c0_91 = arith.constant 0 : index
    %c0_92 = arith.constant 0 : index
    %217 = vector.load %arg22[%c0_90, %c0_91, %c0_92] : memref<2x8x32xf32, #tpu.memory_space<vmem>>, vector<2x8x32xf32>
    tpu.vector_store %arg22[%c0_90, %c0_91, %c0_92], %216 {strides = array<i32>} : memref<2x8x32xf32, #tpu.memory_space<vmem>>, vector<2x8x32xf32>,
    %c1_i32 = arith.constant 1 : i32
    %218 = arith.cmpi eq, %arg0, %c1_i32 : i32
    %219 = arith.extui %218 : i1 to i32
    %c0_i32_93 = arith.constant 0 : i32
    %220 = arith.cmpi ne, %219, %c0_i32_93 : i32
    scf.if %220 {
      %c0_94 = arith.constant 0 : index
      %c0_95 = arith.constant 0 : index
      %c0_96 = arith.constant 0 : index
      %221 = vector.load %arg21[%c0_94, %c0_95, %c0_96] : memref<2x8x32xf32, #tpu.memory_space<vmem>>, vector<2x8x32xf32>
      tpu.vector_store %arg21[%c0_94, %c0_95, %c0_96], %216 {strides = array<i32>} : memref<2x8x32xf32, #tpu.memory_space<vmem>>, vector<2x8x32xf32>,
    } else {
    }
    return
  }
  func.func @transform_0(%arg0: i32) -> (i32, i32, i32) {
    %c0_i32 = arith.constant 0 : i32
    %c0_i32_0 = arith.constant 0 : i32
    %c0_i32_1 = arith.constant 0 : i32
    %c0_i32_2 = arith.constant 0 : i32
    return %c0_i32, %c0_i32_0, %c0_i32_1 : i32, i32, i32
  }
  func.func @transform_1(%arg0: i32) -> (i32, i32, i32) {
    %c0_i32 = arith.constant 0 : i32
    %c0_i32_0 = arith.constant 0 : i32
    %c0_i32_1 = arith.constant 0 : i32
    %c0_i32_2 = arith.constant 0 : i32
    return %c0_i32, %c0_i32_0, %c0_i32_1 : i32, i32, i32
  }
  func.func @transform_2(%arg0: i32) -> (i32, i32) {
    %c0_i32 = arith.constant 0 : i32
    %c0_i32_0 = arith.constant 0 : i32
    %c0_i32_1 = arith.constant 0 : i32
    return %c0_i32, %c0_i32_0 : i32, i32
  }
  func.func @transform_3(%arg0: i32) -> (i32, i32) {
    %c0_i32 = arith.constant 0 : i32
    %c0_i32_0 = arith.constant 0 : i32
    %c0_i32_1 = arith.constant 0 : i32
    return %c0_i32, %c0_i32_0 : i32, i32
  }
  func.func @transform_4(%arg0: i32) -> (i32, i32, i32) {
    %c0_i32 = arith.constant 0 : i32
    %c0_i32_0 = arith.constant 0 : i32
    %c0_i32_1 = arith.constant 0 : i32
    return %arg0, %c0_i32, %c0_i32_0 : i32, i32, i32
  }
  func.func @transform_5(%arg0: i32) -> (i32, i32, i32) {
    %c0_i32 = arith.constant 0 : i32
    %c0_i32_0 = arith.constant 0 : i32
    %c0_i32_1 = arith.constant 0 : i32
    return %arg0, %c0_i32, %c0_i32_0 : i32, i32, i32
  }
  func.func @transform_6(%arg0: i32) -> (i32, i32, i32) {
    %c0_i32 = arith.constant 0 : i32
    %c0_i32_0 = arith.constant 0 : i32
    %c0_i32_1 = arith.constant 0 : i32
    return %arg0, %c0_i32, %c0_i32_0 : i32, i32, i32
  }
  func.func @transform_7(%arg0: i32) -> (i32, i32, i32) {
    %c0_i32 = arith.constant 0 : i32
    %c0_i32_0 = arith.constant 0 : i32
    %c0_i32_1 = arith.constant 0 : i32
    return %arg0, %c0_i32, %c0_i32_0 : i32, i32, i32
  }
  func.func @transform_8(%arg0: i32) -> (i32, i32, i32) {
    %c0_i32 = arith.constant 0 : i32
    %c0_i32_0 = arith.constant 0 : i32
    %c0_i32_1 = arith.constant 0 : i32
    return %arg0, %c0_i32, %c0_i32_0 : i32, i32, i32
  }
  func.func @transform_9(%arg0: i32) -> (i32, i32, i32) {
    %c0_i32 = arith.constant 0 : i32
    %c0_i32_0 = arith.constant 0 : i32
    %c0_i32_1 = arith.constant 0 : i32
    return %arg0, %c0_i32, %c0_i32_0 : i32, i32, i32
  }
  func.func @transform_10(%arg0: i32) -> (i32, i32, i32) {
    %c0_i32 = arith.constant 0 : i32
    %c0_i32_0 = arith.constant 0 : i32
    %c0_i32_1 = arith.constant 0 : i32
    return %arg0, %c0_i32, %c0_i32_0 : i32, i32, i32
  }
  func.func @transform_11(%arg0: i32) -> (i32, i32, i32) {
    %c0_i32 = arith.constant 0 : i32
    %c0_i32_0 = arith.constant 0 : i32
    %c0_i32_1 = arith.constant 0 : i32
    return %arg0, %c0_i32, %c0_i32_0 : i32, i32, i32
  }
  func.func @transform_12(%arg0: i32) -> (i32, i32, i32) {
    %c0_i32 = arith.constant 0 : i32
    %c0_i32_0 = arith.constant 0 : i32
    %c0_i32_1 = arith.constant 0 : i32
    return %arg0, %c0_i32, %c0_i32_0 : i32, i32, i32
  }
  func.func @transform_13(%arg0: i32) -> (i32, i32, i32) {
    %c0_i32 = arith.constant 0 : i32
    %c0_i32_0 = arith.constant 0 : i32
    %c0_i32_1 = arith.constant 0 : i32
    return %arg0, %c0_i32, %c0_i32_0 : i32, i32, i32
  }
  func.func @transform_14(%arg0: i32) -> (i32, i32, i32) {
    %c0_i32 = arith.constant 0 : i32
    %c0_i32_0 = arith.constant 0 : i32
    %c0_i32_1 = arith.constant 0 : i32
    return %arg0, %c0_i32, %c0_i32_0 : i32, i32, i32
  }
  func.func @transform_15(%arg0: i32) -> (i32, i32, i32) {
    %c0_i32 = arith.constant 0 : i32
    %c0_i32_0 = arith.constant 0 : i32
    %c0_i32_1 = arith.constant 0 : i32
    return %arg0, %c0_i32, %c0_i32_0 : i32, i32, i32
  }
  func.func @transform_16(%arg0: i32) -> (i32, i32, i32) {
    %c0_i32 = arith.constant 0 : i32
    %c0_i32_0 = arith.constant 0 : i32
    %c0_i32_1 = arith.constant 0 : i32
    return %arg0, %c0_i32, %c0_i32_0 : i32, i32, i32
  }
  func.func @transform_17(%arg0: i32) -> (i32, i32, i32) {
    %c0_i32 = arith.constant 0 : i32
    %c0_i32_0 = arith.constant 0 : i32
    %c0_i32_1 = arith.constant 0 : i32
    return %arg0, %c0_i32, %c0_i32_0 : i32, i32, i32
  }
  func.func @transform_18(%arg0: i32) -> (i32, i32, i32) {
    %c0_i32 = arith.constant 0 : i32
    %c0_i32_0 = arith.constant 0 : i32
    %c0_i32_1 = arith.constant 0 : i32
    return %arg0, %c0_i32, %c0_i32_0 : i32, i32, i32
  }
  func.func @transform_19(%arg0: i32) -> (i32, i32, i32) {
    %c0_i32 = arith.constant 0 : i32
    %c0_i32_0 = arith.constant 0 : i32
    %c0_i32_1 = arith.constant 0 : i32
    return %arg0, %c0_i32, %c0_i32_0 : i32, i32, i32
  }
  func.func @transform_20(%arg0: i32) -> (i32, i32, i32) {
    %c0_i32 = arith.constant 0 : i32
    %c0_i32_0 = arith.constant 0 : i32
    %c0_i32_1 = arith.constant 0 : i32
    %c0_i32_2 = arith.constant 0 : i32
    return %c0_i32, %c0_i32_0, %c0_i32_1 : i32, i32, i32
  }
}

</mosaic_0001>

<bundles_post_ra>
// kernel: encode.1
= control target key start
LH: loop header
LB: loop body
LE: loop exit
PB: predicated region body
PF: predicated region fallthrough
CT: control target
= control target key end

     0   :  { %s3607_s0 = inlined_call_operand.vmem [shape: f32[2,8,32], index: 0, kind: input, shape index: {}]   ;;  %s3608_s1 = inlined_call_operand.vmem [shape: f32[2,1,8], index: 1, kind: input, shape index: {}]   ;;  %s3609_s2 = inlined_call_operand.vmem [shape: f32[1,32], index: 2, kind: input, shape index: {}]   ;;  %s3610_s3 = inlined_call_operand.vmem [shape: f32[1,32], index: 3, kind: input, shape index: {}]   ;;  %s3611_s4 = inlined_call_operand.vmem [shape: bf16[2,32,32], index: 4, kind: input, shape index: {}]   ;;  %s3612_s5 = inlined_call_operand.vmem [shape: f32[2,1,32], index: 5, kind: input, shape index: {}]   ;;  %s3613_s6 = inlined_call_operand.vmem [shape: bf16[2,32,32], index: 6, kind: input, shape index: {}]   ;;  %s3614_s7 = inlined_call_operand.vmem [shape: f32[2,1,32], index: 7, kind: input, shape index: {}]   ;;  %s3615_s8 = inlined_call_operand.vmem [shape: bf16[2,32,32], index: 8, kind: input, shape index: {}]   ;;  %s3616_s9 = inlined_call_operand.vmem [shape: f32[2,1,32], index: 9, kind: input, shape index: {}]   ;;  %s3617_s10 = inlined_call_operand.vmem [shape: bf16[2,32,32], index: 10, kind: input, shape index: {}]   ;;  %s3618_s11 = inlined_call_operand.vmem [shape: f32[2,1,32], index: 11, kind: input, shape index: {}]   ;;  %s3619_s12 = inlined_call_operand.vmem [shape: f32[2,1,32], index: 12, kind: input, shape index: {}]   ;;  %s3620_s13 = inlined_call_operand.vmem [shape: f32[2,1,32], index: 13, kind: input, shape index: {}]   ;;  %s3621_s14 = inlined_call_operand.vmem [shape: bf16[2,32,128], index: 14, kind: input, shape index: {}]   ;;  %s3622_s15 = inlined_call_operand.vmem [shape: f32[2,1,128], index: 15, kind: input, shape index: {}]   ;;  %s3623_s16 = inlined_call_operand.vmem [shape: bf16[2,128,32], index: 16, kind: input, shape index: {}]   ;;  %s3624_s17 = inlined_call_operand.vmem [shape: f32[2,1,32], index: 17, kind: input, shape index: {}]   ;;  %s3625_s18 = inlined_call_operand.vmem [shape: f32[2,1,32], index: 18, kind: input, shape index: {}]   ;;  %s3626_s19 = inlined_call_operand.vmem [shape: f32[2,1,32], index: 19, kind: input, shape index: {}]   ;;  %s3627_s20 = inlined_call_operand.hbm [shape: f32[2,8,32], index: 20, kind: output, shape index: {}]  }
   0x1   :  { %3634 = sst [smem:[#allocation8_spill]] %s3607_s0 }
   0x2   :  { %3635 = sst [smem:[#allocation9_spill]] %s3608_s1 }
   0x3   :  { %3636 = sst [smem:[#allocation10_spill]] %s3609_s2 }
   0x4   :  { %3637 = sst [smem:[#allocation11_spill]] %s3610_s3 }
   0x5   :  { %3638 = sst [smem:[#allocation12_spill]] %s3611_s4 }
   0x6   :  { %3639 = sst [smem:[#allocation13_spill]] %s3612_s5 }
   0x7   :  { %3640 = sst [smem:[#allocation14_spill]] %s3613_s6 }
   0x8   :  { %3641 = sst [smem:[#allocation15_spill]] %s3614_s7 }
   0x9   :  { %3642 = sst [smem:[#allocation16_spill]] %s3615_s8 }
   0xa   :  { %3643 = sst [smem:[#allocation17_spill]] %s3617_s10 }
   0xb   :  { %3644 = sst [smem:[#allocation18_spill]] %s3621_s14 }
   0xc   :  { %3645 = sst [smem:[#allocation19_spill]] %s3626_s19 }
   0xd   :  { %3646 = sst [smem:[#allocation20_spill]] %s3627_s20 }
   0xe   :  { %25 = vsyncpa [#allocation4], 0  ;;  %s3157_s1 = smov 0  }
   0xf LB: > { %3647 = sst [smem:[#allocation6_spill]] %s3040_s1  ;;  %s3163_s22 = sadd.s32 4294967295, %s3040_s1   ;;  %s3040_s1 = sphi %s3157_s1, %s31_s1  }
  0x10   : > { %3648 = sst [smem:[#allocation7_spill]] %s3163_s22  ;;  %p2609_p0 = scmp.ge.s32.totalorder %s3040_s1, 1 }
  0x11   : > { %p688_p1 = scmp.lt.s32.totalorder %s3040_s1, 3 }
  0x13   : > { %p689_p2 = pnand %p2609_p0, %p688_p1 }
  0x14   : > { %p796_p3 = scmp.lt.s32.totalorder (!%p689_p2), %s3163_s22, 1  ;;  %s3650_s28 = sld [smem:[#allocation12_spill]] (!%p689_p2) }
  0x15   : > { %692 = sbr.rel (%p689_p2) target bundleno = 4435 (0x1153), region = 100  ;;  %s3651_s6 = sld [smem:[#allocation14_spill]] (!%p689_p2) }
  0x16   : > { %s3653_s8 = sld [smem:[#allocation16_spill]] (!%p689_p2)  ;;  %s3654_s10 = sld [smem:[#allocation17_spill]] (!%p689_p2) }
  0x17   : > { %s3655_s14 = sld [smem:[#allocation18_spill]] (!%p689_p2)  ;;  %s3656_s20 = sld [smem:[#allocation19_spill]] (!%p689_p2) }
  0x18   : > { %s3657_s27 = sld [smem:[#allocation7_spill]] (!%p689_p2) }
  0x1c   : > { %s3169_s23 = scalar_select %p796_p3, %s3163_s22, 1 }
  0x1e   : > { %s2681_s24 = sshll.u32 %s3169_s23, 4  ;;  %s849_s19 = scalar_lea.vmem %s3624_s17, %s3169_s23 }
  0x1f   : > { %s3179_s4 = scalar_lea.vmem %s3650_s28, %s2681_s24  ;;  %s3184_s0 = scalar_lea.vmem %s3651_s6, %s2681_s24 }
  0x20   : > { %s3193_s2 = scalar_lea.vmem %s3653_s8, %s2681_s24  ;;  %s3202_s5 = scalar_lea.vmem %s3654_s10, %s2681_s24 }
  0x21   : > { %s3219_s25 = scalar_lea.vmem %s3655_s14, %s2681_s24  ;;  %s2686_s10 = sshll.u32 %s3169_s23, 6 }
  0x22   : > { %s3229_s6 = scalar_lea.vmem %s3623_s16, %s2686_s10  ;;  %s852_s7 = scalar_lea.vmem %s3625_s18, %s3169_s23 }
  0x23   : > { %s855_s14 = scalar_lea.vmem %s3656_s20, %s3169_s23  ;;  %p2622_p4 = scmp.ne.s32.totalorder %s3657_s27, 0 }
  0x24   : > { %s3658_s29 = sld [smem:[#allocation8_spill]] (!%p2622_p4)  ;;  %vm865_vm0 = vcmask (!%p2622_p4), 261120   ;;  %s3659_s26 = sld [smem:[#allocation10_spill]] (!%p2622_p4) }
  0x25   : > { %860 = sbr.rel (%p2622_p4) target bundleno = 361 (0x169), region = 104  ;;  %s3660_s22 = sld [smem:[#allocation11_spill]] (!%p2622_p4) }
  0x2a   : > { %v861_v0 = vld [vmem:[%s3658_s29] sm:$0xff] (!%p2622_p4)  ;;  %v862_v1 = vld [vmem:[%s3658_s29 + $0x8] sm:$0xff] (!%p2622_p4) }
  0x2b   : > { %v866_v2 = vsel (!%p2622_p4), %vm865_vm0, %v861_v0, 0.0  ;;  %v869_v3 = vsel (!%p2622_p4), %vm865_vm0, %v862_v1, 0.0  ;;  %v2623_v21 = vld [vmem:[%s3659_s26] ss:$0 sm:$0xff] (!%p2622_p4) }
  0x2c   : > { %867 = vadd.xlane.f32.xlu0 %v866_v2  ;;  %v2624_v23 = vld [vmem:[%s3660_s22] ss:$0 sm:$0xff] }
  0x30   : > { %870 = vadd.xlane.f32.xlu0 %v869_v3 }
  0xb9   : > { %v868_v4 = vpop.xlane.xlu0 %867 }
  0xba   : > { %v873_v5 = vmul.f32 0.03125, %v868_v4 }
  0xbc   : > { %v875_v6 = vsub.f32 %v861_v0, %v873_v5 }
  0xbd   : > { %v871_v7 = vpop.xlane.xlu0 %870 }
  0xbe   : > { %v874_v8 = vmul.f32 0.03125, %v871_v7  ;;  %v877_v9 = vmul.f32 %v875_v6, %v875_v6 }
  0xc0   : > { %v876_v10 = vsub.f32 %v862_v1, %v874_v8  ;;  %v879_v11 = vsel %vm865_vm0, %v877_v9, 0.0 }
  0xc1   : > { %880 = vadd.xlane.f32.xlu1 %v879_v11 }
  0xc2   : > { %v878_v12 = vmul.f32 %v876_v10, %v876_v10 }
  0xc4   : > { %v882_v13 = vsel %vm865_vm0, %v878_v12, 0.0 }
  0xc5   : > { %883 = vadd.xlane.f32.xlu1 %v882_v13 }
 0x14e   : > { %v881_v14 = vpop.xlane.xlu1 %880 }
 0x14f   : > { %v885_v15 = vmul.f32 0.03125, %v881_v14 }
 0x151   : > { %v887_v16 = vadd.f32 1e-12, %v885_v15 }
 0x152   : > { %v884_v17 = vpop.xlane.xlu1 %883 }
 0x153   : > { %2923 = vrsqrt.f32 %v887_v16  ;;  %v886_v18 = vmul.f32 0.03125, %v884_v17 }
 0x155   : > { %v888_v19 = vadd.f32 1e-12, %v886_v18 }
 0x157   : > { %2925 = vrsqrt.f32 %v888_v19 }
 0x15d   : > { %v2924_v20 = vpop.eup %2923 }
 0x15e   : > { %v891_v22 = vmul.f32 %v2924_v20, %v875_v6 }
 0x160   : > { %v899_v24 = vmul.f32 %v2623_v21, %v891_v22 }
 0x161   : > { %v2926_v25 = vpop.eup %2925 }
 0x162   : > { %v907_v26 = vadd.f32 %v2624_v23, %v899_v24  ;;  %v892_v27 = vmul.f32 %v2926_v25, %v876_v10 }
 0x164   : > { %909 = vst.msk [vmem:[#allocation2] sm:$0xff] %vm865_vm0, %v907_v26  ;;  %v900_v28 = vmul.f32 %v2623_v21, %v892_v27 }
 0x166   : > { %v908_v29 = vadd.f32 %v2624_v23, %v900_v28 }
 0x168   : > { %910 = vst.msk [vmem:[#allocation2 + $0x8] sm:$0xff] %vm865_vm0, %v908_v29 }
 0x169 PF: > { %v2942_v30 = vld [vmem:[%s3179_s4] sm:$0xff]   ;;  %v3042_v31 = vmov 0.0   ;;  %v2943_v32 = vld [vmem:[%s3179_s4 + $0x8] sm:$0xff]   ;;  %vm3043_vm1 = vmmov 0   ;;  %vm937_vm2 = vcmask 261120   ;;  %s3661_s24 = sld [smem:[#allocation15_spill]]  ;;  %s3665_s26 = scalar_lea.vmem %s3616_s9, %s3169_s23 }
 0x16a   : > { %2743 = vmatprep.subr.bf16.mxu0 %v3042_v31  ;;  %2767 = vmatprep.subr.bf16.mxu1 %v3042_v31  ;;  %v2944_v35 = vld [vmem:[%s3184_s0] sm:$0xff]   ;;  %v2945_v37 = vld [vmem:[%s3184_s0 + $0x8] sm:$0xff]   ;;  %vm1132_vm3 = vcmask 64512   ;;  %s3044_s30 = smov 120   ;;  %vm1252_vm4 = vcmask 1043456   ;;  %s3666_s22 = sld [smem:[#allocation9_spill]] }
 0x16b   : > { %2744 = vmatpush3.bf16.msra.mxu0 %v2942_v30  ;;  %2747 = vmatprep.mubr.msk.bf16.mxu0 %vm3043_vm1, %v3042_v31  ;;  %v3268_v33 = vld [vmem:[#allocation2] sm:$0xff]  ;;  %v2947_v39 = vld [vmem:[%s3193_s2 + $0x8] sm:$0xff]   ;;  %s3047_s27 = smov 8   ;;  %s3048_s28 = smov 16   ;;  %vm2034_vm5 = vcmask 130048   ;;  %vm2037_vm6 = vcmask 195584  }
 0x16c   : > { %2745 = vmatprep.subr.bf16.mxu0 %v3042_v31  ;;  %2769 = vmatprep.mubr.msk.bf16.mxu1 %vm3043_vm1, %v3042_v31  ;;  %v2946_v38 = vld [vmem:[%s3193_s2] sm:$0xff]   ;;  %s3663_s2 = sld [smem:[#allocation13_spill]]  ;;  %s3669_s21 = scalar_lea.vmem %s3620_s13, %s3169_s23 }
 0x16d   : > { %v2633_v63 = vld [vmem:[%s3665_s26] ss:$0 sm:$0xff] }
 0x16f   : > { %v3270_v34 = vld [vmem:[#allocation2 + $0x8] sm:$0xff]  ;;  %2746 = vmatpush3.bf16.msra.mxu0 %v2943_v32  ;;  %s3662_s3 = scalar_lea.vmem %s3661_s24, %s3169_s23  ;;  %s3045_s24 = smov 112  }
 0x170   : > { %v913_v36 = vpack.c.bf16 %v3270_v34, %v3268_v33  ;;  %2751 = vmatprep.subr.bf16.mxu0 %v3042_v31  ;;  %v2629_v44 = vld [vmem:[%s3662_s3] ss:$0 sm:$0xff]  ;;  %v3352_v11 = vld [vmem:[%s3666_s22 + $0x1] ss:$0 sm:$0xff]  ;;  %s3046_s3 = smov 104  }
 0x171   : > { %v3347_v9 = vld [vmem:[%s3666_s22] ss:$0 sm:$0xff] }
 0x172   : > { %2748 = vmatmul.mubr.msk.bf16.vlgmr.msra.gmra.mrb[0].mxu0 %vm937_vm2, %v913_v36  ;;  %s3664_s10 = scalar_lea.vmem %s3663_s2, %s3169_s23  ;;  %s3049_s2 = smov 24  }
 0x173   : > { %2752 = vmatpush3.bf16.msra.mxu0 %v2944_v35  ;;  %2755 = vmatprep.mubr.msk.bf16.mxu0 %vm3043_vm1, %v3042_v31  ;;  %v2625_v45 = vld [vmem:[%s3664_s10] ss:$0 sm:$0xff] }
 0x174   : > { %2753 = vmatprep.subr.bf16.mxu0 %v3042_v31 }
 0x177   : > { %2754 = vmatpush3.bf16.msra.mxu0 %v2945_v37 }
 0x178   : > { %2759 = vmatprep.subr.bf16.mxu0 %v3042_v31 }
 0x17a   : > { %2756 = vmatmul.mubr.msk.bf16.vlgmr.msra.gmra.mrb[4].mxu0 %vm937_vm2, %v913_v36 }
 0x17b   : > { %2763 = vmatprep.mubr.msk.bf16.mxu0 %vm3043_vm1, %v3042_v31  ;;  %2760 = vmatpush3.bf16.msra.mxu0 %v2946_v38 }
 0x17c   : > { %2761 = vmatprep.subr.bf16.mxu0 %v3042_v31 }
 0x17f   : > { %2762 = vmatpush3.bf16.msra.mxu0 %v2947_v39 }
 0x180   : > { %2773 = vmatprep.subr.bf16.mxu0 %v3042_v31 }
 0x182   : > { %2764 = vmatmul.mubr.msk.bf16.vlgmr.msra.gmra.mrb[8].mxu0 %vm937_vm2, %v913_v36 }
 0x183   : > { %2775 = vmatprep.mubr.msk.bf16.mxu0 %vm3043_vm1, %v3042_v31 }
 0x245   : > { %v975_v40 = vpop.f32.mrb[0].mxu0 }
 0x246   : > { %v2749_v41 = vpop.f32.mrb[1].mxu0  ;;  %v976_v50 = vadd.f32 %v2625_v45, %v975_v40 }
 0x247   : > { %v978_v42 = vpop.f32.mrb[2].mxu0 }
 0x248   : > { %v2750_v43 = vpop.f32.mrb[3].mxu0  ;;  %v979_v54 = vadd.f32 %v2625_v45, %v978_v42  ;;  %v1110_v57 = vmul.f32 0.35355338, %v976_v50 }
 0x24a   : > { %v1111_v59 = vmul.f32 0.35355338, %v979_v54  ;;  %v3317_v60 = vpack.c.bf16 %v1110_v57, %v1110_v57 }
 0x24c   : > { %v3319_v61 = vpack.c.bf16 %v1111_v59, %v1111_v59 }
 0x24d   : > { %v1039_v46 = vpop.f32.mrb[4].mxu0 }
 0x24e   : > { %v1040_v47 = vadd.f32 %v2629_v44, %v1039_v46  ;;  %v2757_v48 = vpop.f32.mrb[5].mxu0 }
 0x24f   : > { %v1042_v49 = vpop.f32.mrb[6].mxu0 }
 0x250   : > { %v3305_v51 = vpack.c.bf16 %v1040_v47, %v1040_v47  ;;  %v1043_v52 = vadd.f32 %v2629_v44, %v1042_v49  ;;  %v2758_v53 = vpop.f32.mrb[7].mxu0 }
 0x252   : > { %v3307_v55 = vpack.c.bf16 %v1043_v52, %v1043_v52  ;;  %v1137_v56 = vsel %vm1132_vm3, %v3305_v51, 0 }
 0x253   : > { %2768 = vmatpush3.bf16.xpose.msra.mxu1 %v1137_v56 }
 0x254   : > { %1398 = vrot.lane.b32.xlu1 %v3307_v55, %s3044_s30  ;;  %v1183_v58 = vsel %vm1132_vm3, %v3307_v55, 0  ;;  %2779 = vmatprep.subr.bf16.mxu1 %v3042_v31 }
 0x255   : > { %2774 = vmatpush3.bf16.xpose.msra.mxu0 %v1183_v58  ;;  %v1103_v62 = vpop.f32.mrb[8].mxu0 }
 0x256   : > { %2785 = vmatprep.subr.bf16.mxu0 %v3042_v31  ;;  %v2765_v0 = vpop.f32.mrb[9].mxu0  ;;  %v1104_v3 = vadd.f32 %v2633_v63, %v1103_v62 }
 0x257   : > { %v1106_v1 = vpop.f32.mrb[10].mxu0 }
 0x258   : > { %v2766_v2 = vpop.f32.mrb[11].mxu0  ;;  %v1107_v4 = vadd.f32 %v2633_v63, %v1106_v1  ;;  %v3334_v5 = vpack.c.bf16 %v1104_v3, %v1104_v3 }
 0x25a   : > { %2770 = vmatmul.mubr.msk.bf16.vlgmr.msra.gmra.mrb[0].mxu1 %vm1132_vm3, %v3317_v60  ;;  %v3336_v6 = vpack.c.bf16 %v1107_v4, %v1107_v4  ;;  %v1254_v7 = vsel %vm1252_vm4, %v3334_v5, 0 }
 0x25b   : > { %2781 = vmatprep.mubr.msk.bf16.mxu1 %vm3043_vm1, %v3042_v31  ;;  %2780 = vmatpush3.bf16.msra.mxu1 %v1254_v7 }
 0x25c   : > { %2776 = vmatmul.mubr.msk.bf16.vlgmr.msra.gmra.mrb[12].mxu0 %vm1132_vm3, %v3319_v61  ;;  %v1300_v8 = vsel %vm1252_vm4, %v3336_v6, 0  ;;  %2791 = vmatprep.subr.bf16.mxu1 %v3042_v31 }
 0x25d   : > { %2787 = vmatprep.mubr.msk.bf16.mxu0 %vm3043_vm1, %v3042_v31  ;;  %2786 = vmatpush3.bf16.msra.mxu0 %v1300_v8 }
 0x25e   : > { %2797 = vmatprep.subr.bf16.mxu0 %v3042_v31 }
 0x2c6   : > { %v1399_v36 = vpop.permute.xlu1 %1398 }
 0x2c7   : > { %v1404_v47 = vsel %vm1132_vm3, %v1399_v36, 0 }
 0x32d   : > { %v1173_v10 = vpop.f32.mrb[0].mxu1 }
 0x32e   : > { %v1174_v12 = vadd.f32 %v3347_v9, %v1173_v10  ;;  %v2771_v13 = vpop.f32.mrb[1].mxu1 }
 0x32f   : > { %v1176_v14 = vpop.f32.mrb[2].mxu1  ;;  %v1219_v15 = vpop.f32.mrb[12].mxu0 }
 0x330   : > { %v1220_v16 = vadd.f32 %v3352_v11, %v1219_v15  ;;  %v2772_v17 = vpop.f32.mrb[3].mxu1  ;;  %v2777_v18 = vpop.f32.mrb[13].mxu0  ;;  %v1225_v19 = vsel %vm1132_vm3, %v1174_v12, -inf }
 0x331   : > { %1226 = vmax.xlane.f32.xlu0 %v1225_v19  ;;  %v1222_v20 = vpop.f32.mrb[14].mxu0 }
 0x332   : > { %v2778_v21 = vpop.f32.mrb[15].mxu0  ;;  %v1228_v22 = vsel %vm1132_vm3, %v1220_v16, -inf }
 0x335   : > { %1229 = vmax.xlane.f32.xlu0 %v1228_v22 }
 0x34b   : > { %1346 = vrot.lane.b32.xlu0 %v3305_v51, %s3044_s30 }
 0x3be   : > { %v1227_v23 = vpop.xlane.xlu0 %1226 }
 0x3bf   : > { %v1231_v24 = vsub.f32 %v1174_v12, %v1227_v23 }
 0x3c1   : > { %v1233_v25 = vmul.f32 1.442695, %v1231_v24 }
 0x3c2   : > { %v1230_v26 = vpop.xlane.xlu0 %1229 }
 0x3c3   : > { %2960 = vpow2.f32 %v1233_v25  ;;  %v1232_v27 = vsub.f32 %v1220_v16, %v1230_v26 }
 0x3c5   : > { %v1235_v28 = vmul.f32 1.442695, %v1232_v27 }
 0x3c6   : > { %v1347_v41 = vpop.permute.xlu0 %1346 }
 0x3c7   : > { %2962 = vpow2.f32 %v1235_v28  ;;  %v1352_v44 = vsel %vm1132_vm3, %v1347_v41, 0 }
 0x3cd   : > { %v2961_v29 = vpop.eup %2960 }
 0x3ce   : > { %v1237_v30 = vsel %vm1132_vm3, %v2961_v29, 0.0 }
 0x3cf   : > { %1238 = vadd.xlane.f32.xlu1 %v1237_v30 }
 0x3d1   : > { %v2963_v32 = vpop.eup %2962 }
 0x3d2   : > { %v1240_v35 = vsel %vm1132_vm3, %v2963_v32, 0.0 }
 0x3d3   : > { %1241 = vadd.xlane.f32.xlu1 %v1240_v35 }
 0x3e4   : > { %1343 = vrot.lane.b32.xlu1 %v3317_v60, %s3044_s30 }
 0x3e8   : > { %1395 = vrot.lane.b32.xlu1 %v3319_v61, %s3044_s30 }
 0x45c   : > { %v1239_v37 = vpop.xlane.xlu1 %1238 }
 0x45d   : > { %2964 = vrcp.f32 %v1239_v37 }
 0x460   : > { %v1242_v38 = vpop.xlane.xlu1 %1241 }
 0x461   : > { %2966 = vrcp.f32 %v1242_v38 }
 0x464   : > { %v1344_v48 = vpop.permute.xlu1 %1343 }
 0x467   : > { %v2965_v39 = vpop.eup %2964 }
 0x468   : > { %v1245_v40 = vmul.f32 %v2965_v39, %v2961_v29  ;;  %v1396_v49 = vpop.permute.xlu1 %1395 }
 0x46a   : > { %v1247_v42 = vpack.c.bf16 %v1245_v40, %v1245_v40 }
 0x46b   : > { %v2967_v43 = vpop.eup %2966 }
 0x46c   : > { %v1246_v45 = vmul.f32 %v2967_v43, %v2963_v32  ;;  %2782 = vmatmul.mubr.msk.bf16.vlgmr.msra.gmra.mrb[4].mxu1 %vm1132_vm3, %v1247_v42 }
 0x46d   : > { %2792 = vmatpush3.bf16.xpose.msra.mxu1 %v1352_v44  ;;  %2793 = vmatprep.mubr.msk.bf16.mxu1 %vm3043_vm1, %v3042_v31 }
 0x46e   : > { %v1248_v46 = vpack.c.bf16 %v1246_v45, %v1246_v45  ;;  %2803 = vmatprep.subr.bf16.mxu1 %v3042_v31 }
 0x470   : > { %2788 = vmatmul.mubr.msk.bf16.vlgmr.msra.gmra.mrb[16].mxu0 %vm1132_vm3, %v1248_v46 }
 0x471   : > { %2798 = vmatpush3.bf16.xpose.msra.mxu0 %v1404_v47  ;;  %2799 = vmatprep.mubr.msk.bf16.mxu0 %vm3043_vm1, %v3042_v31 }
 0x472   : > { %2809 = vmatprep.subr.bf16.mxu0 %v3042_v31 }
 0x474   : > { %2794 = vmatmul.mubr.msk.bf16.vlgmr.msra.gmra.mrb[8].mxu1 %vm1132_vm3, %v1344_v48 }
 0x475   : > { %2805 = vmatprep.mubr.msk.bf16.mxu1 %vm3043_vm1, %v3042_v31 }
 0x478   : > { %2800 = vmatmul.mubr.msk.bf16.vlgmr.msra.gmra.mrb[20].mxu0 %vm1132_vm3, %v1396_v49 }
 0x479   : > { %2811 = vmatprep.mubr.msk.bf16.mxu0 %vm3043_vm1, %v3042_v31 }
 0x53f   : > { %v3382_v50 = vpop.f32.mrb[4].mxu1 }
 0x540   : > { %v2783_v52 = vpop.f32.mrb[5].mxu1 }
 0x541   : > { %v1293_v53 = vpop.f32.mrb[6].mxu1 }
 0x542   : > { %v2784_v54 = vpop.f32.mrb[7].mxu1 }
 0x543   : > { %v3384_v56 = vpop.f32.mrb[16].mxu0 }
 0x544   : > { %v2789_v57 = vpop.f32.mrb[17].mxu0 }
 0x545   : > { %v1339_v58 = vpop.f32.mrb[18].mxu0 }
 0x546   : > { %v2790_v59 = vpop.f32.mrb[19].mxu0 }
 0x547   : > { %v1388_v62 = vpop.f32.mrb[8].mxu1 }
 0x548   : > { %v1389_v63 = vadd.f32 %v3347_v9, %v1388_v62  ;;  %v2795_v0 = vpop.f32.mrb[9].mxu1 }
 0x549   : > { %v1391_v1 = vpop.f32.mrb[10].mxu1 }
 0x54a   : > { %v2796_v2 = vpop.f32.mrb[11].mxu1  ;;  %v1446_v3 = vsel %vm1132_vm3, %v1389_v63, -inf }
 0x54b   : > { %1447 = vmax.xlane.f32.xlu0 %v1446_v3  ;;  %v1440_v4 = vpop.f32.mrb[20].mxu0 }
 0x54c   : > { %v1441_v7 = vadd.f32 %v3352_v11, %v1440_v4  ;;  %v2801_v8 = vpop.f32.mrb[21].mxu0 }
 0x54d   : > { %v1443_v10 = vpop.f32.mrb[22].mxu0 }
 0x54e   : > { %v2802_v12 = vpop.f32.mrb[23].mxu0  ;;  %v1449_v13 = vsel %vm1132_vm3, %v1441_v7, -inf }
 0x54f   : > { %1450 = vmax.xlane.f32.xlu1 %v1449_v13 }
 0x560   : > { %1520 = vrot.lane.b32.xlu1 %v3336_v6, %s3044_s30 }
 0x564   : > { %1570 = vrot.lane.b32.xlu1 %v3305_v51, %s3045_s24 }
 0x568   : > { %1620 = vrot.lane.b32.xlu1 %v3307_v55, %s3045_s24 }
 0x56c   : > { %1618 = vrot.lane.b32.xlu1 %v3319_v61, %s3045_s24 }
 0x5d8   : > { %v1448_v14 = vpop.xlane.xlu0 %1447 }
 0x5d9   : > { %v1452_v15 = vsub.f32 %v1389_v63, %v1448_v14 }
 0x5db   : > { %v1454_v16 = vmul.f32 1.442695, %v1452_v15 }
 0x5dc   : > { %v1451_v17 = vpop.xlane.xlu1 %1450 }
 0x5dd   : > { %2968 = vpow2.f32 %v1454_v16  ;;  %v1453_v18 = vsub.f32 %v1441_v7, %v1451_v17 }
 0x5df   : > { %v1456_v19 = vmul.f32 1.442695, %v1453_v18 }
 0x5e0   : > { %v1521_v20 = vpop.permute.xlu1 %1520 }
 0x5e1   : > { %2970 = vpow2.f32 %v1456_v19  ;;  %v1526_v21 = vsel %vm1252_vm4, %v1521_v20, 0 }
 0x5e2   : > { %2810 = vmatpush3.bf16.msra.mxu0 %v1526_v21 }
 0x5e3   : > { %2821 = vmatprep.subr.bf16.mxu0 %v3042_v31 }
 0x5e4   : > { %v1571_v32 = vpop.permute.xlu1 %1570 }
 0x5e5   : > { %v1576_v40 = vsel %vm1132_vm3, %v1571_v32, 0 }
 0x5e7   : > { %v2969_v22 = vpop.eup %2968 }
 0x5e8   : > { %v1458_v23 = vsel %vm1132_vm3, %v2969_v22, 0.0  ;;  %v1621_v39 = vpop.permute.xlu1 %1620 }
 0x5e9   : > { %1459 = vadd.xlane.f32.xlu0 %v1458_v23  ;;  %v1626_v42 = vsel %vm1132_vm3, %v1621_v39, 0 }
 0x5eb   : > { %v2971_v24 = vpop.eup %2970 }
 0x5ec   : > { %v1461_v25 = vsel %vm1132_vm3, %v2971_v24, 0.0  ;;  %v1619_v44 = vpop.permute.xlu1 %1618 }
 0x5ed   : > { %1462 = vadd.xlane.f32.xlu0 %v1461_v25 }
 0x603   : > { %1471 = vrot.lane.b32.xlu0 %v3334_v5, %s3044_s30  ;;  %s3667_s30 = scalar_lea.vmem %s3618_s11, %s3169_s23 }
 0x607   : > { %1568 = vrot.lane.b32.xlu0 %v3317_v60, %s3045_s24 }
 0x676   : > { %v1460_v26 = vpop.xlane.xlu0 %1459 }
 0x677   : > { %2972 = vrcp.f32 %v1460_v26 }
 0x67a   : > { %v1463_v27 = vpop.xlane.xlu0 %1462 }
 0x67b   : > { %2974 = vrcp.f32 %v1463_v27 }
 0x67e   : > { %v1472_v28 = vpop.permute.xlu0 %1471 }
 0x67f   : > { %v1477_v29 = vsel %vm1252_vm4, %v1472_v28, 0 }
 0x680   : > { %2804 = vmatpush3.bf16.msra.mxu1 %v1477_v29 }
 0x681   : > { %v2973_v30 = vpop.eup %2972  ;;  %2815 = vmatprep.subr.bf16.mxu1 %v3042_v31 }
 0x682   : > { %v1466_v35 = vmul.f32 %v2973_v30, %v2969_v22  ;;  %v1569_v43 = vpop.permute.xlu0 %1568 }
 0x684   : > { %v1468_v36 = vpack.c.bf16 %v1466_v35, %v1466_v35 }
 0x685   : > { %v2975_v37 = vpop.eup %2974 }
 0x686   : > { %v1467_v38 = vmul.f32 %v2975_v37, %v2971_v24  ;;  %2806 = vmatmul.mubr.msk.bf16.vlgmr.msra.gmra.mrb[12].mxu1 %vm1132_vm3, %v1468_v36 }
 0x687   : > { %2817 = vmatprep.mubr.msk.bf16.mxu1 %vm3043_vm1, %v3042_v31 }
 0x688   : > { %v1469_v41 = vpack.c.bf16 %v1467_v38, %v1467_v38 }
 0x689   : > { %2816 = vmatpush3.bf16.xpose.msra.mxu1 %v1576_v40 }
 0x68a   : > { %2812 = vmatmul.mubr.msk.bf16.vlgmr.msra.gmra.mrb[24].mxu0 %vm1132_vm3, %v1469_v41  ;;  %2827 = vmatprep.subr.bf16.mxu1 %v3042_v31 }
 0x68b   : > { %2822 = vmatpush3.bf16.xpose.msra.mxu0 %v1626_v42  ;;  %2823 = vmatprep.mubr.msk.bf16.mxu0 %vm3043_vm1, %v3042_v31 }
 0x68c   : > { %2833 = vmatprep.subr.bf16.mxu0 %v3042_v31 }
 0x690   : > { %2818 = vmatmul.mubr.msk.bf16.vlgmr.msra.gmra.mrb[16].mxu1 %vm1132_vm3, %v1569_v43 }
 0x691   : > { %2829 = vmatprep.mubr.msk.bf16.mxu1 %vm3043_vm1, %v3042_v31 }
 0x692   : > { %2824 = vmatmul.mubr.msk.bf16.vlgmr.msra.gmra.mrb[28].mxu0 %vm1132_vm3, %v1619_v44 }
 0x693   : > { %2835 = vmatprep.mubr.msk.bf16.mxu0 %vm3043_vm1, %v3042_v31 }
 0x759   : > { %v3424_v45 = vpop.f32.mrb[12].mxu1 }
 0x75a   : > { %v2807_v46 = vpop.f32.mrb[13].mxu1 }
 0x75b   : > { %v1516_v47 = vpop.f32.mrb[14].mxu1 }
 0x75c   : > { %v2808_v48 = vpop.f32.mrb[15].mxu1 }
 0x75d   : > { %v3426_v49 = vpop.f32.mrb[24].mxu0 }
 0x75e   : > { %v2927_v52 = vpack.i.bf16 %v3426_v49, %v3424_v45  ;;  %v2813_v53 = vpop.f32.mrb[25].mxu0 }
 0x75f   : > { %v1565_v54 = vpop.f32.mrb[26].mxu0 }
 0x760   : > { %v2814_v57 = vpop.f32.mrb[27].mxu0 }
 0x763   : > { %v1612_v58 = vpop.f32.mrb[16].mxu1 }
 0x764   : > { %v1613_v59 = vadd.f32 %v3347_v9, %v1612_v58  ;;  %v2819_v62 = vpop.f32.mrb[17].mxu1 }
 0x765   : > { %v1615_v63 = vpop.f32.mrb[18].mxu1  ;;  %v1662_v0 = vpop.f32.mrb[28].mxu0 }
 0x766   : > { %v1663_v1 = vadd.f32 %v3352_v11, %v1662_v0  ;;  %v2820_v2 = vpop.f32.mrb[19].mxu1  ;;  %v2825_v3 = vpop.f32.mrb[29].mxu0  ;;  %v1668_v4 = vsel %vm1132_vm3, %v1613_v59, -inf }
 0x767   : > { %1669 = vmax.xlane.f32.xlu0 %v1668_v4  ;;  %v1665_v7 = vpop.f32.mrb[30].mxu0 }
 0x768   : > { %v2826_v8 = vpop.f32.mrb[31].mxu0  ;;  %v1671_v10 = vsel %vm1132_vm3, %v1663_v1, -inf }
 0x769   : > { %1672 = vmax.xlane.f32.xlu1 %v1671_v10 }
 0x77a   : > { %1740 = vrot.lane.b32.xlu1 %v3336_v6, %s3045_s24 }
 0x77e   : > { %1790 = vrot.lane.b32.xlu1 %v3305_v51, %s3046_s3 }
 0x782   : > { %1840 = vrot.lane.b32.xlu1 %v3307_v55, %s3046_s3 }
 0x786   : > { %1838 = vrot.lane.b32.xlu1 %v3319_v61, %s3046_s3 }
 0x7f4   : > { %v1670_v12 = vpop.xlane.xlu0 %1669 }
 0x7f5   : > { %v1674_v13 = vsub.f32 %v1613_v59, %v1670_v12 }
 0x7f6   : > { %v1673_v14 = vpop.xlane.xlu1 %1672 }
 0x7f7   : > { %v1676_v15 = vmul.f32 1.442695, %v1674_v13  ;;  %v1675_v16 = vsub.f32 %v1663_v1, %v1673_v14 }
 0x7f9   : > { %2976 = vpow2.f32 %v1676_v15  ;;  %v1678_v17 = vmul.f32 1.442695, %v1675_v16 }
 0x7fa   : > { %v1741_v18 = vpop.permute.xlu1 %1740 }
 0x7fb   : > { %2978 = vpow2.f32 %v1678_v17  ;;  %v1746_v19 = vsel %vm1252_vm4, %v1741_v18, 0 }
 0x7fc   : > { %2834 = vmatpush3.bf16.msra.mxu0 %v1746_v19 }
 0x7fd   : > { %2845 = vmatprep.subr.bf16.mxu0 %v3042_v31 }
 0x7fe   : > { %v1791_v26 = vpop.permute.xlu1 %1790 }
 0x802   : > { %v1841_v32 = vpop.permute.xlu1 %1840 }
 0x803   : > { %v2977_v51 = vpop.eup %2976  ;;  %v1846_v36 = vsel %vm1132_vm3, %v1841_v32, 0 }
 0x804   : > { %v1680_v55 = vsel %vm1132_vm3, %v2977_v51, 0.0 }
 0x805   : > { %v2979_v20 = vpop.eup %2978  ;;  %1681 = vadd.xlane.f32.xlu0 %v1680_v55 }
 0x806   : > { %v1683_v61 = vsel %vm1132_vm3, %v2979_v20, 0.0  ;;  %v1839_v38 = vpop.permute.xlu1 %1838 }
 0x809   : > { %1684 = vadd.xlane.f32.xlu0 %v1683_v61 }
 0x81f   : > { %1692 = vrot.lane.b32.xlu0 %v3334_v5, %s3045_s24  ;;  %s3670_s24 = scalar_lea.vmem %s3622_s15, %s3169_s23 }
 0x823   : > { %1788 = vrot.lane.b32.xlu0 %v3317_v60, %s3046_s3  ;;  %v1796_v60 = vsel %vm1132_vm3, %v1791_v26, 0 }
 0x892   : > { %v1682_v21 = vpop.xlane.xlu0 %1681 }
 0x893   : > { %2980 = vrcp.f32 %v1682_v21  ;;  %v2948_v21 = vld [vmem:[%s3202_s5] sm:$0xff]  }
 0x896   : > { %v1685_v22 = vpop.xlane.xlu0 %1684 }
 0x897   : > { %2982 = vrcp.f32 %v1685_v22  ;;  %v2949_v22 = vld [vmem:[%s3202_s5 + $0x8] sm:$0xff]  }
 0x89a   : > { %v1693_v23 = vpop.permute.xlu0 %1692 }
 0x89b   : > { %v1698_v24 = vsel %vm1252_vm4, %v1693_v23, 0 }
 0x89c   : > { %2828 = vmatpush3.bf16.msra.mxu1 %v1698_v24 }
 0x89d   : > { %v2981_v25 = vpop.eup %2980  ;;  %2839 = vmatprep.subr.bf16.mxu1 %v3042_v31 }
 0x89e   : > { %v1688_v27 = vmul.f32 %v2981_v25, %v2977_v51  ;;  %v1789_v37 = vpop.permute.xlu0 %1788 }
 0x8a0   : > { %v1690_v28 = vpack.c.bf16 %v1688_v27, %v1688_v27 }
 0x8a1   : > { %v2983_v29 = vpop.eup %2982 }
 0x8a2   : > { %v1689_v30 = vmul.f32 %v2983_v29, %v2979_v20  ;;  %2830 = vmatmul.mubr.msk.bf16.vlgmr.msra.gmra.mrb[20].mxu1 %vm1132_vm3, %v1690_v28 }
 0x8a3   : > { %2841 = vmatprep.mubr.msk.bf16.mxu1 %vm3043_vm1, %v3042_v31 }
 0x8a4   : > { %v1691_v35 = vpack.c.bf16 %v1689_v30, %v1689_v30 }
 0x8a5   : > { %2840 = vmatpush3.bf16.xpose.msra.mxu1 %v1796_v60 }
 0x8a6   : > { %2836 = vmatmul.mubr.msk.bf16.vlgmr.msra.gmra.mrb[32].mxu0 %vm1132_vm3, %v1691_v35  ;;  %2851 = vmatprep.subr.bf16.mxu1 %v3042_v31 }
 0x8a7   : > { %2846 = vmatpush3.bf16.xpose.msra.mxu0 %v1846_v36  ;;  %2847 = vmatprep.mubr.msk.bf16.mxu0 %vm3043_vm1, %v3042_v31 }
 0x8a8   : > { %2857 = vmatprep.subr.bf16.mxu0 %v3042_v31 }
 0x8ac   : > { %2842 = vmatmul.mubr.msk.bf16.vlgmr.msra.gmra.mrb[24].mxu1 %vm1132_vm3, %v1789_v37 }
 0x8ad   : > { %2853 = vmatprep.mubr.msk.bf16.mxu1 %vm3043_vm1, %v3042_v31 }
 0x8ae   : > { %2848 = vmatmul.mubr.msk.bf16.vlgmr.msra.gmra.mrb[36].mxu0 %vm1132_vm3, %v1839_v38 }
 0x8af   : > { %2859 = vmatprep.mubr.msk.bf16.mxu0 %vm3043_vm1, %v3042_v31 }
 0x975   : > { %v1734_v39 = vpop.f32.mrb[20].mxu1 }
 0x976   : > { %v2831_v40 = vpop.f32.mrb[21].mxu1 }
 0x977   : > { %v1737_v41 = vpop.f32.mrb[22].mxu1 }
 0x978   : > { %v2832_v42 = vpop.f32.mrb[23].mxu1 }
 0x979   : > { %v1782_v43 = vpop.f32.mrb[32].mxu0 }
 0x97a   : > { %v2932_v44 = vpack.i.bf16 %v1782_v43, %v1734_v39  ;;  %v2837_v46 = vpop.f32.mrb[33].mxu0 }
 0x97b   : > { %v1785_v47 = vpop.f32.mrb[34].mxu0 }
 0x97c   : > { %v2838_v48 = vpop.f32.mrb[35].mxu0 }
 0x97f   : > { %v1832_v53 = vpop.f32.mrb[24].mxu1 }
 0x980   : > { %v1833_v54 = vadd.f32 %v3347_v9, %v1832_v53  ;;  %v2843_v57 = vpop.f32.mrb[25].mxu1 }
 0x981   : > { %v1835_v58 = vpop.f32.mrb[26].mxu1  ;;  %v1882_v59 = vpop.f32.mrb[36].mxu0 }
 0x982   : > { %v1883_v62 = vadd.f32 %v3352_v11, %v1882_v59  ;;  %v2844_v63 = vpop.f32.mrb[27].mxu1  ;;  %v2849_v0 = vpop.f32.mrb[37].mxu0  ;;  %v1888_v1 = vsel %vm1132_vm3, %v1833_v54, -inf }
 0x983   : > { %1889 = vmax.xlane.f32.xlu0 %v1888_v1  ;;  %v1885_v2 = vpop.f32.mrb[38].mxu0 }
 0x984   : > { %v2850_v3 = vpop.f32.mrb[39].mxu0  ;;  %v1891_v4 = vsel %vm1132_vm3, %v1883_v62, -inf }
 0x985   : > { %1892 = vmax.xlane.f32.xlu1 %v1891_v4 }
 0x996   : > { %1960 = vrot.lane.b32.xlu1 %v3336_v6, %s3046_s3 }
 0x99a   : > { %2928 = vrot.lane.b32.xlu1 %v2927_v52, %s3047_s27 }
 0x99e   : > { %2933 = vrot.lane.b32.xlu1 %v2932_v44, %s3048_s28 }
 0xa10   : > { %v1890_v9 = vpop.xlane.xlu0 %1889 }
 0xa11   : > { %v1894_v11 = vsub.f32 %v1833_v54, %v1890_v9 }
 0xa12   : > { %v1893_v7 = vpop.xlane.xlu1 %1892 }
 0xa13   : > { %v1896_v8 = vmul.f32 1.442695, %v1894_v11  ;;  %v1895_v10 = vsub.f32 %v1883_v62, %v1893_v7 }
 0xa15   : > { %2984 = vpow2.f32 %v1896_v8  ;;  %v1898_v12 = vmul.f32 1.442695, %v1895_v10 }
 0xa16   : > { %v1961_v13 = vpop.permute.xlu1 %1960 }
 0xa17   : > { %2986 = vpow2.f32 %v1898_v12  ;;  %v1966_v14 = vsel %vm1252_vm4, %v1961_v13, 0 }
 0xa18   : > { %2858 = vmatpush3.bf16.msra.mxu0 %v1966_v14 }
 0xa19   : > { %2871 = vmatprep.subr.bf16.mxu0 %v3042_v31 }
 0xa1a   : > { %v2929_v60 = vpop.permute.xlu1 %2928 }
 0xa1b   : > { %v2931_v36 = vunpack.i.h.bf16 %v2929_v60  ;;  %v2930_v37 = vunpack.i.l.bf16 %v2929_v60  ;;  %v2959_v60 = vld [vmem:[%s3229_s6 + $0x38] sm:$0xff]  }
 0xa1d   : > { %v2033_v41 = vsel %vm1132_vm3, %v3384_v56, %v2931_v36  ;;  %v2032_v42 = vsel %vm1132_vm3, %v3382_v50, %v2930_v37  ;;  %v2655_v56 = vld [vmem:[%s3667_s30] ss:$0 sm:$0xff]  ;;  %s3672_s30 = sld [smem:[#allocation7_spill]] }
 0xa1e   : > { %v2934_v35 = vpop.permute.xlu1 %2933 }
 0xa1f   : > { %v2985_v6 = vpop.eup %2984  ;;  %v2936_v38 = vunpack.i.h.bf16 %v2934_v35  ;;  %v2935_v39 = vunpack.i.l.bf16 %v2934_v35  ;;  %v2661_v35 = vld [vmem:[%s3670_s24] ss:$0 sm:$0xff] }
 0xa20   : > { %v1900_v45 = vsel %vm1132_vm3, %v2985_v6, 0.0 }
 0xa21   : > { %v2987_v49 = vpop.eup %2986  ;;  %1901 = vadd.xlane.f32.xlu0 %v1900_v45  ;;  %v2035_v46 = vsel %vm2034_vm5, %v2032_v42, %v2935_v39  ;;  %v2036_v47 = vsel %vm2034_vm5, %v2033_v41, %v2936_v38 }
 0xa22   : > { %v1903_v52 = vsel %vm1132_vm3, %v2987_v49, 0.0 }
 0xa23   : > { %p2676_p5 = scmp.ne.s32.totalorder %s3672_s30, 1 }
 0xa25   : > { %1904 = vadd.xlane.f32.xlu0 %v1903_v52 }
 0xa3b   : > { %1912 = vrot.lane.b32.xlu0 %v3334_v5, %s3046_s3 }
 0xaae   : > { %v1902_v15 = vpop.xlane.xlu0 %1901 }
 0xaaf   : > { %2988 = vrcp.f32 %v1902_v15 }
 0xab2   : > { %v1905_v16 = vpop.xlane.xlu0 %1904 }
 0xab3   : > { %2990 = vrcp.f32 %v1905_v16 }
 0xab6   : > { %v1913_v17 = vpop.permute.xlu0 %1912 }
 0xab7   : > { %v1918_v18 = vsel %vm1252_vm4, %v1913_v17, 0 }
 0xab8   : > { %2852 = vmatpush3.bf16.msra.mxu1 %v1918_v18 }
 0xab9   : > { %v2989_v19 = vpop.eup %2988  ;;  %2863 = vmatprep.subr.bf16.mxu1 %v3042_v31 }
 0xaba   : > { %v1908_v51 = vmul.f32 %v2989_v19, %v2985_v6  ;;  %v2951_v6 = vld [vmem:[%s3219_s25 + $0x8] sm:$0xff]  }
 0xabc   : > { %v1910_v55 = vpack.c.bf16 %v1908_v51, %v1908_v51 }
 0xabd   : > { %v2991_v20 = vpop.eup %2990 }
 0xabe   : > { %v1909_v61 = vmul.f32 %v2991_v20, %v2987_v49  ;;  %2854 = vmatmul.mubr.msk.bf16.vlgmr.msra.gmra.mrb[28].mxu1 %vm1132_vm3, %v1910_v55 }
 0xabf   : > { %2867 = vmatprep.mubr.msk.bf16.mxu1 %vm3043_vm1, %v3042_v31  ;;  %2864 = vmatpush3.bf16.msra.mxu1 %v2948_v21 }
 0xac0   : > { %v1911_v5 = vpack.c.bf16 %v1909_v61, %v1909_v61  ;;  %2865 = vmatprep.subr.bf16.mxu1 %v3042_v31 }
 0xac2   : > { %2860 = vmatmul.mubr.msk.bf16.vlgmr.msra.gmra.mrb[40].mxu0 %vm1132_vm3, %v1911_v5  ;;  %v2660_v5 = vld [vmem:[%s3669_s21] ss:$0 sm:$0xff] }
 0xac3   : > { %2875 = vmatprep.mubr.msk.bf16.mxu0 %vm3043_vm1, %v3042_v31  ;;  %2866 = vmatpush3.bf16.msra.mxu1 %v2949_v22 }
 0xac4   : > { %2879 = vmatprep.subr.bf16.mxu1 %v3042_v31 }
 0xb91   : > { %v1954_v23 = vpop.f32.mrb[28].mxu1 }
 0xb92   : > { %v2855_v24 = vpop.f32.mrb[29].mxu1 }
 0xb93   : > { %v1957_v25 = vpop.f32.mrb[30].mxu1 }
 0xb94   : > { %v2856_v26 = vpop.f32.mrb[31].mxu1  ;;  %v2952_v25 = vld [vmem:[%s3229_s6] sm:$0xff]  }
 0xb95   : > { %v2002_v27 = vpop.f32.mrb[40].mxu0  ;;  %v2953_v26 = vld [vmem:[%s3229_s6 + $0x8] sm:$0xff]  }
 0xb96   : > { %v2937_v28 = vpack.i.bf16 %v2002_v27, %v1954_v23  ;;  %v2861_v29 = vpop.f32.mrb[41].mxu0  ;;  %v2954_v27 = vld [vmem:[%s3229_s6 + $0x10] sm:$0xff]  }
 0xb97   : > { %v2005_v30 = vpop.f32.mrb[42].mxu0  ;;  %v2956_v29 = vld [vmem:[%s3229_s6 + $0x20] sm:$0xff]  }
 0xb98   : > { %2938 = vrot.lane.b32.xlu0 %v2937_v28, %s3049_s2  ;;  %v2862_v32 = vpop.f32.mrb[43].mxu0  ;;  %v2955_v28 = vld [vmem:[%s3229_s6 + $0x18] sm:$0xff]   ;;  %v2957_v30 = vld [vmem:[%s3229_s6 + $0x28] sm:$0xff]  }
 0xb99   : > { %v2958_v32 = vld [vmem:[%s3229_s6 + $0x30] sm:$0xff]  }
 0xc0a   : > { %v2939_v40 = vpop.permute.xlu0 %2938 }
 0xc0b   : > { %v2941_v43 = vunpack.i.h.bf16 %v2939_v40  ;;  %v2940_v44 = vunpack.i.l.bf16 %v2939_v40 }
 0xc0d   : > { %v2039_v48 = vsel %vm2037_vm6, %v2036_v47, %v2941_v43  ;;  %v2038_v53 = vsel %vm2037_vm6, %v2035_v46, %v2940_v44 }
 0xc0e   : > { %v2040_v54 = vpack.c.bf16 %v2039_v48, %v2038_v53 }
 0xc10   : > { %2868 = vmatmul.mubr.msk.bf16.vlgmr.msra.gmra.mrb[32].mxu1 %vm937_vm2, %v2040_v54 }
 0xc11   : > { %2895 = vmatprep.mubr.msk.bf16.mxu1 %vm3043_vm1, %v3042_v31  ;;  %2880 = vmatpush3.bf16.msra.mxu1 %v2952_v25 }
 0xc12   : > { %2881 = vmatprep.subr.bf16.mxu1 %v3042_v31 }
 0xc15   : > { %2882 = vmatpush3.bf16.msra.mxu1 %v2953_v26  ;;  %v2675_v26 = vld [vmem:[%s855_s14] ss:$0 sm:$0xff] }
 0xc16   : > { %2883 = vmatprep.subr.bf16.mxu1 %v3042_v31 }
 0xc19   : > { %2884 = vmatpush3.bf16.msra.mxu1 %v2954_v27 }
 0xc1a   : > { %2885 = vmatprep.subr.bf16.mxu1 %v3042_v31 }
 0xc1d   : > { %2886 = vmatpush3.bf16.msra.mxu1 %v2955_v28 }
 0xc1e   : > { %2887 = vmatprep.subr.bf16.mxu1 %v3042_v31 }
 0xc21   : > { %2888 = vmatpush3.bf16.msra.mxu1 %v2956_v29 }
 0xc22   : > { %2889 = vmatprep.subr.bf16.mxu1 %v3042_v31 }
 0xc25   : > { %2890 = vmatpush3.bf16.msra.mxu1 %v2957_v30 }
 0xc26   : > { %2891 = vmatprep.subr.bf16.mxu1 %v3042_v31 }
 0xc29   : > { %2892 = vmatpush3.bf16.msra.mxu1 %v2958_v32 }
 0xc2a   : > { %2893 = vmatprep.subr.bf16.mxu1 %v3042_v31 }
 0xc2d   : > { %2894 = vmatpush3.bf16.msra.mxu1 %v2959_v60 }
 0xce3   : > { %v2101_v57 = vpop.f32.mrb[32].mxu1 }
 0xce4   : > { %v2102_v58 = vadd.f32 %v2655_v56, %v2101_v57  ;;  %v2869_v50 = vpop.f32.mrb[33].mxu1 }
 0xce5   : > { %v2104_v59 = vpop.f32.mrb[34].mxu1 }
 0xce6   : > { %v2105_v62 = vadd.f32 %v2655_v56, %v2104_v59  ;;  %v2870_v63 = vpop.f32.mrb[35].mxu1  ;;  %v2108_v0 = vadd.f32 %v2102_v58, %v3268_v33 }
 0xce8   : > { %v2112_v1 = vsel %vm937_vm2, %v2108_v0, 0.0  ;;  %v2109_v2 = vadd.f32 %v2105_v62, %v3270_v34  ;;  %v2950_v34 = vld [vmem:[%s3219_s25] sm:$0xff]   ;;  %s3668_s25 = scalar_lea.vmem %s3619_s12, %s3169_s23 }
 0xce9   : > { %2113 = vadd.xlane.f32.xlu1 %v2112_v1  ;;  %2872 = vmatpush3.bf16.msra.mxu0 %v2950_v34  ;;  %v2659_v51 = vld [vmem:[%s3668_s25] ss:$0 sm:$0xff] }
 0xcea   : > { %v2115_v3 = vsel %vm937_vm2, %v2109_v2, 0.0  ;;  %2873 = vmatprep.subr.bf16.mxu0 %v3042_v31 }
 0xceb   : > { %2116 = vadd.xlane.f32.xlu0 %v2115_v3  ;;  %v2665_v3 = vld [vmem:[%s849_s19] ss:$0 sm:$0xff] }
 0xced   : > { %2874 = vmatpush3.bf16.msra.mxu0 %v2951_v6 }
 0xd76   : > { %v2114_v4 = vpop.xlane.xlu1 %2113 }
 0xd77   : > { %v2119_v9 = vmul.f32 0.03125, %v2114_v4 }
 0xd78   : > { %v2117_v11 = vpop.xlane.xlu0 %2116 }
 0xd79   : > { %v2121_v7 = vsub.f32 %v2108_v0, %v2119_v9  ;;  %v2120_v8 = vmul.f32 0.03125, %v2117_v11 }
 0xd7b   : > { %v2122_v10 = vsub.f32 %v2109_v2, %v2120_v8  ;;  %v2123_v12 = vmul.f32 %v2121_v7, %v2121_v7 }
 0xd7d   : > { %v2125_v13 = vsel %vm937_vm2, %v2123_v12, 0.0  ;;  %v2124_v33 = vmul.f32 %v2122_v10, %v2122_v10 }
 0xd7e   : > { %2126 = vadd.xlane.f32.xlu0 %v2125_v13 }
 0xd7f   : > { %v2128_v14 = vsel %vm937_vm2, %v2124_v33, 0.0 }
 0xd82   : > { %2129 = vadd.xlane.f32.xlu0 %v2128_v14 }
 0xe0b   : > { %v2127_v45 = vpop.xlane.xlu0 %2126 }
 0xe0c   : > { %v2131_v49 = vmul.f32 0.03125, %v2127_v45 }
 0xe0e   : > { %v2133_v52 = vadd.f32 1e-12, %v2131_v49 }
 0xe0f   : > { %v2130_v15 = vpop.xlane.xlu0 %2129 }
 0xe10   : > { %2992 = vrsqrt.f32 %v2133_v52  ;;  %v2132_v16 = vmul.f32 0.03125, %v2130_v15 }
 0xe12   : > { %v2134_v17 = vadd.f32 1e-12, %v2132_v16 }
 0xe14   : > { %2994 = vrsqrt.f32 %v2134_v17 }
 0xe1a   : > { %v2993_v18 = vpop.eup %2992 }
 0xe1b   : > { %v2137_v19 = vmul.f32 %v2993_v18, %v2121_v7 }
 0xe1d   : > { %v2145_v20 = vmul.f32 %v2659_v51, %v2137_v19 }
 0xe1e   : > { %v2995_v55 = vpop.eup %2994 }
 0xe1f   : > { %v2138_v61 = vmul.f32 %v2995_v55, %v2122_v10  ;;  %v3527_v22 = vadd.f32 %v2660_v5, %v2145_v20 }
 0xe21   : > { %v2146_v21 = vmul.f32 %v2659_v51, %v2138_v61 }
 0xe23   : > { %v3529_v23 = vadd.f32 %v2660_v5, %v2146_v21 }
 0xe25   : > { %v2155_v24 = vpack.c.bf16 %v3529_v23, %v3527_v22 }
 0xe27   : > { %2876 = vmatmul.mubr.msk.bf16.vlgmr.msra.gmra.mrb[44].mxu0 %vm937_vm2, %v2155_v24 }
 0xefa   : > { %v2216_v36 = vpop.f32.mrb[44].mxu0 }
 0xefb   : > { %v2217_v37 = vadd.f32 %v2661_v35, %v2216_v36  ;;  %v2877_v38 = vpop.f32.mrb[45].mxu0 }
 0xefc   : > { %v2219_v39 = vpop.f32.mrb[46].mxu0 }
 0xefd   : > { %v2223_v40 = vmul.f32 %v2217_v37, %v2217_v37  ;;  %v2220_v41 = vadd.f32 %v2661_v35, %v2219_v39  ;;  %v2878_v42 = vpop.f32.mrb[47].mxu0 }
 0xeff   : > { %v2225_v43 = vmul.f32 %v2223_v40, %v2217_v37  ;;  %v2224_v44 = vmul.f32 %v2220_v41, %v2220_v41 }
 0xf01   : > { %v2227_v46 = vmul.f32 0.044715, %v2225_v43  ;;  %v2226_v47 = vmul.f32 %v2224_v44, %v2220_v41 }
 0xf03   : > { %v2229_v48 = vadd.f32 %v2227_v46, %v2217_v37  ;;  %v2228_v31 = vmul.f32 0.044715, %v2226_v47 }
 0xf05   : > { %v2231_v53 = vmul.f32 0.7978846, %v2229_v48  ;;  %v2230_v54 = vadd.f32 %v2228_v31, %v2220_v41 }
 0xf07   : > { %2996 = vtanh.f32 %v2231_v53  ;;  %v2232_v56 = vmul.f32 0.7978846, %v2230_v54 }
 0xf09   : > { %2998 = vtanh.f32 %v2232_v56 }
 0xf11   : > { %v2997_v57 = vpop.eup %2996 }
 0xf12   : > { %v2235_v58 = vadd.f32 1.0, %v2997_v57 }
 0xf13   : > { %v2999_v50 = vpop.eup %2998 }
 0xf14   : > { %v2237_v59 = vmul.f32 0.5, %v2235_v58  ;;  %v2236_v62 = vadd.f32 1.0, %v2999_v50 }
 0xf16   : > { %v2238_v63 = vmul.f32 0.5, %v2236_v62  ;;  %v2239_v0 = vmul.f32 %v2237_v59, %v2217_v37 }
 0xf18   : > { %v2240_v1 = vmul.f32 %v2238_v63, %v2220_v41 }
 0xf1a   : > { %v2241_v2 = vpack.c.bf16 %v2240_v1, %v2239_v0 }
 0xf1c   : > { %2896 = vmatmul.mubr.bf16.vlgmr.msra.gmra.mrb[36].mxu1 %v2241_v2 }
 0xfef   : > { %v2347_v4 = vpop.f32.mrb[36].mxu1 }
 0xff0   : > { %v2348_v9 = vadd.f32 %v2665_v3, %v2347_v4  ;;  %v2897_v11 = vpop.f32.mrb[37].mxu1 }
 0xff1   : > { %v2350_v7 = vpop.f32.mrb[38].mxu1 }
 0xff2   : > { %v2351_v8 = vadd.f32 %v2665_v3, %v2350_v7  ;;  %v2898_v10 = vpop.f32.mrb[39].mxu1  ;;  %v2354_v12 = vadd.f32 %v2348_v9, %v3527_v22 }
 0xff4   : > { %v2358_v13 = vsel %vm937_vm2, %v2354_v12, 0.0  ;;  %v2355_v33 = vadd.f32 %v2351_v8, %v3529_v23  ;;  %v2674_v23 = vld [vmem:[%s852_s7] ss:$0 sm:$0xff] }
 0xff5   : > { %2359 = vadd.xlane.f32.xlu1 %v2358_v13 }
 0xff6   : > { %v2361_v14 = vsel %vm937_vm2, %v2355_v33, 0.0 }
 0xff7   : > { %2362 = vadd.xlane.f32.xlu0 %v2361_v14 }
0x1082   : > { %v2360_v34 = vpop.xlane.xlu1 %2359 }
0x1083   : > { %v2364_v6 = vmul.f32 0.03125, %v2360_v34 }
0x1084   : > { %v2363_v45 = vpop.xlane.xlu0 %2362 }
0x1085   : > { %v2366_v49 = vsub.f32 %v2354_v12, %v2364_v6  ;;  %v2365_v52 = vmul.f32 0.03125, %v2363_v45 }
0x1087   : > { %v2367_v15 = vsub.f32 %v2355_v33, %v2365_v52  ;;  %v2368_v16 = vmul.f32 %v2366_v49, %v2366_v49 }
0x1089   : > { %v2370_v17 = vsel %vm937_vm2, %v2368_v16, 0.0  ;;  %v2369_v18 = vmul.f32 %v2367_v15, %v2367_v15 }
0x108a   : > { %2371 = vadd.xlane.f32.xlu1 %v2370_v17 }
0x108b   : > { %v2373_v19 = vsel %vm937_vm2, %v2369_v18, 0.0 }
0x108c   : > { %2374 = vadd.xlane.f32.xlu0 %v2373_v19 }
0x1117   : > { %v2372_v51 = vpop.xlane.xlu1 %2371 }
0x1118   : > { %v2376_v55 = vmul.f32 0.03125, %v2372_v51 }
0x1119   : > { %v2375_v20 = vpop.xlane.xlu0 %2374 }
0x111a   : > { %v2378_v61 = vadd.f32 1e-12, %v2376_v55  ;;  %v2377_v5 = vmul.f32 0.03125, %v2375_v20 }
0x111c   : > { %3000 = vrsqrt.f32 %v2378_v61  ;;  %v2379_v21 = vadd.f32 1e-12, %v2377_v5 }
0x111e   : > { %3002 = vrsqrt.f32 %v2379_v21 }
0x1126   : > { %v3001_v22 = vpop.eup %3000 }
0x1127   : > { %v2382_v24 = vmul.f32 %v3001_v22, %v2366_v49 }
0x1128   : > { %v3003_v25 = vpop.eup %3002 }
0x1129   : > { %v2390_v27 = vmul.f32 %v2674_v23, %v2382_v24  ;;  %v2383_v28 = vmul.f32 %v3003_v25, %v2367_v15  ;;  %2405 = sbr.rel (%p2676_p5) target bundleno = 4400 (0x1130), region = 108 }
0x112b   : > { %v2398_v29 = vadd.f32 %v2675_v26, %v2390_v27  ;;  %v2391_v30 = vmul.f32 %v2674_v23, %v2383_v28 }
0x112d   : > { %2400 = vst.msk [vmem:[#allocation2] sm:$0xff] %vm937_vm2, %v2398_v29  ;;  %v2399_v32 = vadd.f32 %v2675_v26, %v2391_v30  ;;  %2406 = vst.msk [vmem:[#allocation3] sm:$0xff] (!%p2676_p5), %vm937_vm2, %v2398_v29 }
0x112f   : > { %2401 = vst.msk [vmem:[#allocation2 + $0x8] sm:$0xff] %vm937_vm2, %v2399_v32  ;;  %2407 = vst.msk [vmem:[#allocation3 + $0x8] sm:$0xff] (!%p2676_p5), %vm937_vm2, %v2399_v32 }
0x1130 PF: > { %s3673_s7 = sld [smem:[#allocation7_spill]]  ;;  %s3050_s14 = smov [#allocation3]  }
0x1131   : > { %s2414_s23 = sshll.u32 %s3050_s14, 4  ;;  %s2415_s23 = int_to_ptr.vmem [resolvable:$true] %s2414_s23 }
0x1132   : > { %s3004_s8 = scalar_lea.vmem %s2415_s23, 256  ;;  %p3011_p10 = scmp.lt.s32.totalorder %s2415_s23, %s2415_s23 }
0x1133   : > { %p3005_p7 = scmp.ne.s32.totalorder %s2415_s23, %s3004_s8  ;;  %p3012_p11 = scmp.lt.s32.totalorder %s3004_s8, %s3004_s8 }
0x1135   : > { %p3013_p12 = por %p3012_p11, %p3011_p10 }
0x1136   : > { %p2903_p6 = scmp.eq.s32.totalorder %s3673_s7, 1 }
0x1138   : > { %p3006_p8 = pnand %p3005_p7, %p2903_p6 }
0x113a   : > { %p3007_p9 = pneg %p3006_p8 }
0x113c   : > { %p3014_p13 = pnand %p3013_p12, %p3007_p9 }
0x113e   : > { %3017 = shalt.err (!%p3014_p13)
}
0x113f   : > { %s3674_s26 = sld [smem:[#allocation20_spill]] }
0x1145   : > { %s3018_s1 = scalar_lea.hbm %s3674_s26, 256 }
0x1146   : > { %p3019_p0 = scmp.ne.s32.totalorder %s3674_s26, %s3018_s1  ;;  %p3024_p3 = scmp.lt.u32.totalorder %s3018_s1, %s3674_s26 }
0x1148   : > { %p3020_p1 = pnand %p3019_p0, %p2903_p6 }
0x114a   : > { %p3021_p2 = pneg %p3020_p1 }
0x114c   : > { %p3026_p4 = pnand %p3024_p3, %p3021_p2 }
0x114e   : > { %3029 = shalt.err (!%p3026_p4)
}
0x114f   : > { %s3051_s6 = smov 128  }
0x1150   : > { %2900 = dma.vmem_to_hbm [thread:$0]  (%p2903_p6), %s2415_s23, 256, %s3674_s26, [#allocation4], %s3051_s6, %s3051_s6, %s3047_s27  }
0x1151   : > { %3035 = dma.done.wait (%p2903_p6), [#allocation4], 256  }
0x1152   : > { %3037 = vsyncadd (%p2903_p6), [#allocation4], 4294967040 }
0x1153 PF: > { %s3675_s28 = sld [smem:[#allocation6_spill]] }
0x1159   : > { %s31_s1 = sadd.s32 1, %s3675_s28  }
0x115a   : > { %p28_p5 = scmp.ge.s32.totalorder %s31_s1, 4  }
0x115c   :  { %30 = sbr.rel (!%p28_p5) target bundleno = 15 (0xf), region = 180 }
0x1163   :  { %2430 = vsyncpa [#allocation4], 1 }
0x1164   :  { %2432 = vsyncpa [#allocation4 + $0x1], 1 }

</bundles_post_ra>
